<compile_context>
chip_gen: v7x
topology: tpu7x:2x2x1
jax: 0.10.0
libtpu: 0.0.40
codegen_flags: <defaults>
</compile_context>

<pallas_src>
import functools

import jax
import jax.numpy as jnp
from jax import lax
from jax.experimental import pallas as pl
from jax.experimental.pallas import tpu as pltpu


def encoder_kernel(x_ref, w_ih_ref, w_hh_ref, b_ref,
                   out_ref, h_out_ref, c_out_ref,
                   gx_scr, out_scr, *, t_real):
    """x_ref: (tT, Bpb, E) bf16 embedded inputs (time-major) for this chunk.
    w_ih_ref: (E, 4Hp) bf16, w_hh_ref: (Hp, 4Hp) bf16, b_ref: (1, 4Hp) f32.
    out_ref: (Bpb, tT, Hp) f32 batch-first output chunk.
    h_out_ref / c_out_ref: (Bpb, Hp) f32 resident state (carried across chunks).
    gx_scr: (tT, Bpb, 4Hp) f32 hoisted input projection.
    out_scr: (tT, Bpb, Hp) f32 time-major staging for the chunk output."""
    tT, Bpb, E = x_ref.shape
    Hp4 = w_hh_ref.shape[1]
    Hp = Hp4 // 4
    t_idx = pl.program_id(1)

    # Zero initial (h, c) on the first time chunk of this batch block; they stay
    # VMEM-resident (constant time index in out_specs) and carry across chunks.
    @pl.when(t_idx == 0)
    def _():
        h_out_ref[...] = jnp.zeros_like(h_out_ref)
        c_out_ref[...] = jnp.zeros_like(c_out_ref)

    # Hoisted input projection for the whole chunk: ONE bf16 MXU matmul with
    # f32 accumulation, bias folded in.
    x_all = x_ref[...].reshape(tT * Bpb, E)
    gx_scr[...] = (
        jnp.dot(x_all, w_ih_ref[...], preferred_element_type=jnp.float32)
        + b_ref[...]
    ).reshape(tT, Bpb, Hp4)

    w_hh = w_hh_ref[...]          # bf16, loaded once, reused every step
    base = t_idx * tT             # global time offset of this chunk

    def step(t, carry):
        h_prev, c_prev = carry
        # Only the recurrent matmul is left inside the serial loop.
        gates = gx_scr[t] + jnp.dot(h_prev.astype(w_hh.dtype), w_hh,
                                    preferred_element_type=jnp.float32)
        # Hp is a multiple of 128 -> every gate slice is lane-aligned.
        i_g = jax.nn.sigmoid(gates[:, 0 * Hp:1 * Hp])
        f_g = jax.nn.sigmoid(gates[:, 1 * Hp:2 * Hp])
        g_g = jnp.tanh(gates[:, 2 * Hp:3 * Hp])
        o_g = jax.nn.sigmoid(gates[:, 3 * Hp:4 * Hp])

        c_new = f_g * c_prev + i_g * g_g
        h_new = o_g * jnp.tanh(c_new)

        if t_real % tT != 0:
            # Time axis was padded: freeze the state on padded steps so the
            # final (h, c) is exactly the state at step t_real - 1.
            keep = (base + t) < t_real
            h_new = jnp.where(keep, h_new, h_prev)
            c_new = jnp.where(keep, c_new, c_prev)

        out_scr[t] = h_new        # full (Bpb, Hp) lane-dense tile store (VMEM)
        return (h_new, c_new)

    h_fin, c_fin = lax.fori_loop(0, tT, step,
                                 (h_out_ref[...], c_out_ref[...]),
                                 unroll=(8 if tT > 16 else True))
    h_out_ref[...] = h_fin
    c_out_ref[...] = c_fin

    # Emit the chunk batch-first with one full, unmasked block store; the
    # (tT, Bpb) <-> (Bpb, tT) relayout runs on the XLU and is hidden under the
    # latency-bound recurrence.  Removes the wrapper-side HBM transpose pass.
    out_ref[...] = pltpu.einshape("tbh->bth", out_scr[...])


def _vmem_capacity_bytes(default=64 * 1024 * 1024):
    try:
        return int(pltpu.get_tpu_info().vmem_capacity_bytes)
    except Exception:
        return default


def _vmem_bytes_estimate(tT, Bpb, E, Hp):
    f32, bf16 = 4, 2
    # Weights/bias are double-buffered by default even with constant index maps.
    weights = 2 * (E * 4 * Hp * bf16 + Hp * 4 * Hp * bf16 + 4 * Hp * f32)
    x_in = 2 * tT * Bpb * E * bf16              # double-buffered input chunk
    out_chunk = 2 * Bpb * tT * Hp * f32         # double-buffered output chunk
    state = 2 * 2 * Bpb * Hp * f32              # resident h, c
    scratch = tT * Bpb * 4 * Hp * f32 + tT * Bpb * Hp * f32
    return weights + x_in + out_chunk + state + scratch


def encoder_forward(ids, params, time_chunk=None):
    """ids: (B, T) int32 token indices.
    Returns (output (B,T,H), hidden (1,B,H), cell (1,B,H)) like the torch module."""
    B, T = ids.shape
    emb = params["emb_weight"]
    w_ih = params["weight_ih_l0"]                       # (4H, E) torch layout
    w_hh = params["weight_hh_l0"]                       # (4H, H)
    bias = (params["bias_ih_l0"] + params["bias_hh_l0"]).astype(jnp.float32)

    V, E = emb.shape
    H = w_hh.shape[1]

    LANE, SUB = 128, 8
    Hp = ((H + LANE - 1) // LANE) * LANE                # lane-aligned hidden size
    Bp = ((B + SUB - 1) // SUB) * SUB                   # sublane-aligned batch

    # Split the batch over a leading "parallel" grid axis so v7x's two
    # TensorCores each run an independent recurrence (neutral on v5e/v6e).
    nB = 2 if (Bp % 16 == 0) else 1
    Bpb = Bp // nB

    # --- time chunk selection -------------------------------------------------
    target = 64 if time_chunk is None else int(time_chunk)
    if T <= target:
        tT = T                                          # single full-extent chunk
    else:
        tT = max(SUB, (target // SUB) * SUB)            # must be a sublane multiple

    vmem_cap = _vmem_capacity_bytes()
    vmem_limit = min((vmem_cap * 3) // 4, 100 * 1024 * 1024)   # ~48 MiB on v7x
    while tT > SUB and _vmem_bytes_estimate(tT, Bpb, E, Hp) > int(vmem_limit * 0.9):
        tT = max(SUB, ((tT // 2) // SUB) * SUB)

    T_pad = ((T + tT - 1) // tT) * tT
    nT = T_pad // tT

    # --- inputs: time-major embedding gather (no wrapper transpose), bf16 ------
    # TODO(synk): for small/moderate vocab, fold emb @ W_ih^T + b into a (V, 4Hp)
    # table gathered per token to drop the in-kernel input projection entirely.
    emb_bf = emb.astype(jnp.bfloat16)
    x = jnp.take(emb_bf, ids.T, axis=0)                 # (T, B, E) time-major
    x = jnp.pad(x, ((0, T_pad - T), (0, Bp - B), (0, 0)))   # (T_pad, Bp, E)

    # Per-gate padding H -> Hp so each gate occupies a lane-aligned 128-multiple
    # block; padded rows/cols of W_hh and bias are zero so padded h/c lanes stay
    # exactly zero and never leak into real gates.  Weights stored bf16 (halves
    # resident VMEM + weight DMA, doubles MXU rate on v6e/v7x).
    w_ih_p = jnp.pad(w_ih.T.reshape(E, 4, H),
                     ((0, 0), (0, 0), (0, Hp - H))).reshape(E, 4 * Hp)
    w_hh_p = jnp.pad(w_hh.T.reshape(H, 4, H),
                     ((0, Hp - H), (0, 0), (0, Hp - H))).reshape(Hp, 4 * Hp)
    w_ih_p = w_ih_p.astype(jnp.bfloat16)
    w_hh_p = w_hh_p.astype(jnp.bfloat16)
    bias_p = jnp.pad(bias.reshape(4, H),
                     ((0, 0), (0, Hp - H))).reshape(1, 4 * Hp)   # f32

    # TODO(synk): pipeline_mode=pl.Buffered(1) on the constant weight/bias specs
    # would halve their VMEM footprint (helps v7x); left at default buffering.
    out_bt, h_n, c_n = pl.pallas_call(
        functools.partial(encoder_kernel, t_real=T),
        out_shape=(
            jax.ShapeDtypeStruct((Bp, T_pad, Hp), jnp.float32),   # batch-first output
            jax.ShapeDtypeStruct((Bp, Hp), jnp.float32),          # final hidden
            jax.ShapeDtypeStruct((Bp, Hp), jnp.float32),          # final cell
        ),
        grid=(nB, nT),
        in_specs=[
            pl.BlockSpec((tT, Bpb, E), lambda b, i: (i, b, 0)),   # activation chunk
            pl.BlockSpec((E, 4 * Hp), lambda b, i: (0, 0)),       # W_ih (resident)
            pl.BlockSpec((Hp, 4 * Hp), lambda b, i: (0, 0)),      # W_hh (resident)
            pl.BlockSpec((1, 4 * Hp), lambda b, i: (0, 0)),       # bias (resident)
        ],
        out_specs=(
            pl.BlockSpec((Bpb, tT, Hp), lambda b, i: (b, i, 0)),  # per-chunk output
            pl.BlockSpec((Bpb, Hp), lambda b, i: (b, 0)),         # resident h state
            pl.BlockSpec((Bpb, Hp), lambda b, i: (b, 0)),         # resident c state
        ),
        scratch_shapes=[
            pltpu.VMEM((tT, Bpb, 4 * Hp), jnp.float32),           # hoisted x-projection
            pltpu.VMEM((tT, Bpb, Hp), jnp.float32),               # time-major out staging
        ],
        compiler_params=pltpu.CompilerParams(
            dimension_semantics=("parallel", "arbitrary"),        # batch ||, time serial
            vmem_limit_bytes=int(vmem_limit),
        ),
    )(x, w_ih_p, w_hh_p, bias_p)

    # Strip padding only; no transpose pass on the wrapper side anymore.
    output = out_bt[:B, :T, :H]                          # (B, T, H) batch_first
    hidden = h_n[:B, :H][None, :, :]                     # (1, B, H)
    cell = c_n[:B, :H][None, :, :]                       # (1, B, H)
    return output, hidden, cell


def init_params(key, input_size, emb_size, hidden_size):
    """Deterministic parameter init mirroring the PyTorch module's shapes."""
    k_emb, k_wih, k_whh, k_bih, k_bhh = jax.random.split(key, 5)
    bound = 1.0 / jnp.sqrt(hidden_size)
    return {
        "emb_weight": jax.random.normal(k_emb, (input_size, emb_size), jnp.float32),
        "weight_ih_l0": jax.random.uniform(k_wih, (4 * hidden_size, emb_size),
                                           jnp.float32, -bound, bound),
        "weight_hh_l0": jax.random.uniform(k_whh, (4 * hidden_size, hidden_size),
                                           jnp.float32, -bound, bound),
        "bias_ih_l0": jax.random.uniform(k_bih, (4 * hidden_size,),
                                         jnp.float32, -bound, bound),
        "bias_hh_l0": jax.random.uniform(k_bhh, (4 * hidden_size,),
                                         jnp.float32, -bound, bound),
    }


def _reference_encoder(ids, params):
    """Pure-JAX reference matching torch.nn.Embedding + 1-layer LSTM (f32)."""
    emb = params["emb_weight"]
    w_ih = params["weight_ih_l0"]
    w_hh = params["weight_hh_l0"]
    b = params["bias_ih_l0"] + params["bias_hh_l0"]
    B, _ = ids.shape
    H = w_hh.shape[1]
    x = jnp.take(emb, ids, axis=0)                 # (B, T, E)

    def cell_step(carry, x_t):
        h, c = carry
        gates = x_t @ w_ih.T + h @ w_hh.T + b
        i, f, g, o = jnp.split(gates, 4, axis=-1)
        c = jax.nn.sigmoid(f) * c + jax.nn.sigmoid(i) * jnp.tanh(g)
        h = jax.nn.sigmoid(o) * jnp.tanh(c)
        return (h, c), h

    h0 = jnp.zeros((B, H), jnp.float32)
    c0 = jnp.zeros((B, H), jnp.float32)
    (hT, cT), ys = lax.scan(cell_step, (h0, c0), jnp.transpose(x, (1, 0, 2)))
    return jnp.transpose(ys, (1, 0, 2)), hT[None], cT[None]


if __name__ == "__main__":
    key = jax.random.PRNGKey(0)

    # --- Test 1: small shapes (batch=2, seq=8, vocab=20, emb=32, hidden=32) ----
    B, T, V, E, H = 2, 8, 20, 32, 32
    k_ids, k_params = jax.random.split(key)
    params = init_params(k_params, input_size=V, emb_size=E, hidden_size=H)
    ids = jax.random.randint(k_ids, (B, T), 0, V, dtype=jnp.int32)

    output, hidden, cell = encoder_forward(ids, params)
    jax.block_until_ready((output, hidden, cell))

    assert output.shape == (B, T, H)
    assert hidden.shape == (1, B, H)
    assert cell.shape == (1, B, H)
    # final hidden must equal the last timestep of the output for a 1-layer LSTM
    assert jnp.allclose(hidden[0], output[:, -1, :], atol=1e-5)

    ref_out, ref_h, ref_c = _reference_encoder(ids, params)
    assert jnp.allclose(output, ref_out, atol=2e-2, rtol=2e-2)
    assert jnp.allclose(hidden, ref_h, atol=2e-2, rtol=2e-2)
    assert jnp.allclose(cell, ref_c, atol=2e-2, rtol=2e-2)

    # --- Test 2: multi-chunk carried (h, c), last-chunk time masking (T % tT != 0)
    # and the batch grid axis (Bp=16 -> two batch blocks / two TCs on v7x). ------
    B2, T2 = 16, 20
    k_ids2, _ = jax.random.split(k_ids)
    ids2 = jax.random.randint(k_ids2, (B2, T2), 0, V, dtype=jnp.int32)

    out2, h2, c2 = encoder_forward(ids2, params, time_chunk=8)
    jax.block_until_ready((out2, h2, c2))

    ref_out2, ref_h2, ref_c2 = _reference_encoder(ids2, params)
    assert out2.shape == (B2, T2, H)
    assert jnp.allclose(h2[0], out2[:, -1, :], atol=1e-5)
    assert jnp.allclose(out2, ref_out2, atol=2e-2, rtol=2e-2)
    assert jnp.allclose(h2, ref_h2, atol=2e-2, rtol=2e-2)
    assert jnp.allclose(c2, ref_c2, atol=2e-2, rtol=2e-2)

    print("KERNEL_OK")
</pallas_src>

<mosaic_0001>
module attributes {stable_mosaic.version = 11 : i64} {
  func.func @encoder_kernel(%arg0: i32, %arg1: i32, %arg2: memref<8x8x32xbf16, #tpu.memory_space<vmem>>, %arg3: memref<32x512xbf16, #tpu.memory_space<vmem>>, %arg4: memref<128x512xbf16, #tpu.memory_space<vmem>>, %arg5: memref<1x512xf32, #tpu.memory_space<vmem>>, %arg6: memref<8x8x128xf32, #tpu.memory_space<vmem>>, %arg7: memref<8x128xf32, #tpu.memory_space<vmem>>, %arg8: memref<8x128xf32, #tpu.memory_space<vmem>>, %arg9: memref<8x8x512xf32, #tpu.memory_space<vmem>>, %arg10: memref<8x8x128xf32, #tpu.memory_space<vmem>>) attributes {dimension_semantics = [#tpu.dimension_semantics<parallel>, #tpu.dimension_semantics<arbitrary>], iteration_bounds = array<i64: 1, 1>, scalar_prefetch = 0 : i64, scratch_operands = 2 : i64, tpu.core_type = #tpu.core_type<tc>, window_params = [{transform_indices = @transform_0, window_bounds = array<i64: 8, 8, 32>}, {pipeline_mode = #tpu.pipeline_mode<synchronous>, transform_indices = @transform_1, window_bounds = array<i64: 32, 512>}, {pipeline_mode = #tpu.pipeline_mode<synchronous>, transform_indices = @transform_2, window_bounds = array<i64: 128, 512>}, {pipeline_mode = #tpu.pipeline_mode<synchronous>, transform_indices = @transform_3, window_bounds = array<i64: 1, 512>}, {transform_indices = @transform_4, window_bounds = array<i64: 8, 8, 128>}, {transform_indices = @transform_5, window_bounds = array<i64: 8, 128>}, {transform_indices = @transform_6, window_bounds = array<i64: 8, 128>}]} {
    %c0_i32 = arith.constant 0 : i32
    %0 = arith.cmpi eq, %arg1, %c0_i32 : i32
    %1 = arith.extui %0 : i1 to i32
    %c0_i32_0 = arith.constant 0 : i32
    %2 = arith.cmpi ne, %1, %c0_i32_0 : i32
    scf.if %2 {
      %cst_91 = arith.constant 0.000000e+00 : f32
      %300 = vector.broadcast %cst_91 : f32 to vector<8x128xf32>
      %c0_92 = arith.constant 0 : index
      %c0_93 = arith.constant 0 : index
      %301 = vector.load %arg7[%c0_92, %c0_93] : memref<8x128xf32, #tpu.memory_space<vmem>>, vector<8x128xf32>
      tpu.vector_store %arg7[%c0_92, %c0_93], %300 {strides = array<i32>} : memref<8x128xf32, #tpu.memory_space<vmem>>, vector<8x128xf32>,
      %cst_94 = arith.constant 0.000000e+00 : f32
      %302 = vector.broadcast %cst_94 : f32 to vector<8x128xf32>
      %c0_95 = arith.constant 0 : index
      %c0_96 = arith.constant 0 : index
      %303 = vector.load %arg8[%c0_95, %c0_96] : memref<8x128xf32, #tpu.memory_space<vmem>>, vector<8x128xf32>
      tpu.vector_store %arg8[%c0_95, %c0_96], %302 {strides = array<i32>} : memref<8x128xf32, #tpu.memory_space<vmem>>, vector<8x128xf32>,
    } else {
    }
    %c0 = arith.constant 0 : index
    %c0_1 = arith.constant 0 : index
    %c0_2 = arith.constant 0 : index
    %3 = vector.load %arg2[%c0, %c0_1, %c0_2] : memref<8x8x32xbf16, #tpu.memory_space<vmem>>, vector<8x8x32xbf16>
    %4 = vector.shape_cast %3 : vector<8x8x32xbf16> to vector<64x32xbf16>
    %c0_3 = arith.constant 0 : index
    %c0_4 = arith.constant 0 : index
    %5 = vector.load %arg3[%c0_3, %c0_4] : memref<32x512xbf16, #tpu.memory_space<vmem>>, vector<32x512xbf16>
    %cst = arith.constant dense<0.000000e+00> : vector<64x512xf32>
    %6 = tpu.matmul %4, %5, %cst {dimension_numbers = #tpu.dot_dimension_numbers<[1], [0], [0], [1], [0, 0, 1, 1], [], []>} : vector<64x32xbf16>, vector<32x512xbf16>, vector<64x512xf32> -> vector<64x512xf32>
    %c0_5 = arith.constant 0 : index
    %c0_6 = arith.constant 0 : index
    %7 = vector.load %arg5[%c0_5, %c0_6] : memref<1x512xf32, #tpu.memory_space<vmem>>, vector<1x512xf32>
    %8 = vector.broadcast %7 : vector<1x512xf32> to vector<64x512xf32>
    %9 = arith.addf %6, %8 : vector<64x512xf32>
    %10 = vector.shape_cast %9 : vector<64x512xf32> to vector<8x8x512xf32>
    %c0_7 = arith.constant 0 : index
    %c0_8 = arith.constant 0 : index
    %c0_9 = arith.constant 0 : index
    %11 = vector.load %arg9[%c0_7, %c0_8, %c0_9] : memref<8x8x512xf32, #tpu.memory_space<vmem>>, vector<8x8x512xf32>
    tpu.vector_store %arg9[%c0_7, %c0_8, %c0_9], %10 {strides = array<i32>} : memref<8x8x512xf32, #tpu.memory_space<vmem>>, vector<8x8x512xf32>,
    %c0_10 = arith.constant 0 : index
    %c0_11 = arith.constant 0 : index
    %12 = vector.load %arg4[%c0_10, %c0_11] : memref<128x512xbf16, #tpu.memory_space<vmem>>, vector<128x512xbf16>
    %c0_12 = arith.constant 0 : index
    %c0_13 = arith.constant 0 : index
    %13 = vector.load %arg7[%c0_12, %c0_13] : memref<8x128xf32, #tpu.memory_space<vmem>>, vector<8x128xf32>
    %c0_14 = arith.constant 0 : index
    %c0_15 = arith.constant 0 : index
    %14 = vector.load %arg8[%c0_14, %c0_15] : memref<8x128xf32, #tpu.memory_space<vmem>>, vector<8x128xf32>
    %c0_i32_16 = arith.constant 0 : i32
    %15 = arith.index_cast %c0_i32_16 : i32 to index
    %c0_17 = arith.constant 0 : index
    %c0_18 = arith.constant 0 : index
    %16 = vector.load %arg9[%15, %c0_17, %c0_18] : memref<8x8x512xf32, #tpu.memory_space<vmem>>, vector<1x8x512xf32>
    %17 = vector.shape_cast %16 : vector<1x8x512xf32> to vector<8x512xf32>
    %18 = arith.truncf %13 : vector<8x128xf32> to vector<8x128xbf16>
    %cst_19 = arith.constant dense<0.000000e+00> : vector<8x512xf32>
    %19 = tpu.matmul %18, %12, %cst_19 {dimension_numbers = #tpu.dot_dimension_numbers<[1], [0], [0], [1], [0, 0, 1, 1], [], []>} : vector<8x128xbf16>, vector<128x512xbf16>, vector<8x512xf32> -> vector<8x512xf32>
    %20 = arith.addf %17, %19 : vector<8x512xf32>
    %21 = vector.extract_strided_slice %20 {offsets = [0, 0], sizes = [8, 128], strides = [1, 1]} : vector<8x512xf32> to vector<8x128xf32>
    %22 = arith.negf %21 : vector<8x128xf32>
    %23 = math.exp %22 : vector<8x128xf32>
    %cst_20 = arith.constant 1.000000e+00 : f32
    %24 = vector.broadcast %cst_20 : f32 to vector<8x128xf32>
    %25 = arith.addf %24, %23 : vector<8x128xf32>
    %26 = arith.divf %24, %25 : vector<8x128xf32>
    %27 = vector.extract_strided_slice %20 {offsets = [0, 128], sizes = [8, 128], strides = [1, 1]} : vector<8x512xf32> to vector<8x128xf32>
    %28 = arith.negf %27 : vector<8x128xf32>
    %29 = math.exp %28 : vector<8x128xf32>
    %cst_21 = arith.constant 1.000000e+00 : f32
    %30 = vector.broadcast %cst_21 : f32 to vector<8x128xf32>
    %31 = arith.addf %30, %29 : vector<8x128xf32>
    %32 = arith.divf %30, %31 : vector<8x128xf32>
    %33 = vector.extract_strided_slice %20 {offsets = [0, 256], sizes = [8, 128], strides = [1, 1]} : vector<8x512xf32> to vector<8x128xf32>
    %34 = math.tanh %33 : vector<8x128xf32>
    %35 = vector.extract_strided_slice %20 {offsets = [0, 384], sizes = [8, 128], strides = [1, 1]} : vector<8x512xf32> to vector<8x128xf32>
    %36 = arith.negf %35 : vector<8x128xf32>
    %37 = math.exp %36 : vector<8x128xf32>
    %cst_22 = arith.constant 1.000000e+00 : f32
    %38 = vector.broadcast %cst_22 : f32 to vector<8x128xf32>
    %39 = arith.addf %38, %37 : vector<8x128xf32>
    %40 = arith.divf %38, %39 : vector<8x128xf32>
    %41 = arith.mulf %32, %14 : vector<8x128xf32>
    %42 = arith.mulf %26, %34 : vector<8x128xf32>
    %43 = arith.addf %41, %42 : vector<8x128xf32>
    %44 = math.tanh %43 : vector<8x128xf32>
    %45 = arith.mulf %40, %44 : vector<8x128xf32>
    %46 = arith.index_cast %c0_i32_16 : i32 to index
    %c0_23 = arith.constant 0 : index
    %c0_24 = arith.constant 0 : index
    %47 = vector.load %arg10[%46, %c0_23, %c0_24] : memref<8x8x128xf32, #tpu.memory_space<vmem>>, vector<1x8x128xf32>
    %48 = vector.shape_cast %47 : vector<1x8x128xf32> to vector<8x128xf32>
    %49 = vector.shape_cast %45 : vector<8x128xf32> to vector<1x8x128xf32>
    tpu.vector_store %arg10[%46, %c0_23, %c0_24], %49 {strides = array<i32>} : memref<8x8x128xf32, #tpu.memory_space<vmem>>, vector<1x8x128xf32>,
    %c1_i32 = arith.constant 1 : i32
    %50 = arith.index_cast %c1_i32 : i32 to index
    %c0_25 = arith.constant 0 : index
    %c0_26 = arith.constant 0 : index
    %51 = vector.load %arg9[%50, %c0_25, %c0_26] : memref<8x8x512xf32, #tpu.memory_space<vmem>>, vector<1x8x512xf32>
    %52 = vector.shape_cast %51 : vector<1x8x512xf32> to vector<8x512xf32>
    %53 = arith.truncf %45 : vector<8x128xf32> to vector<8x128xbf16>
    %cst_27 = arith.constant dense<0.000000e+00> : vector<8x512xf32>
    %54 = tpu.matmul %53, %12, %cst_27 {dimension_numbers = #tpu.dot_dimension_numbers<[1], [0], [0], [1], [0, 0, 1, 1], [], []>} : vector<8x128xbf16>, vector<128x512xbf16>, vector<8x512xf32> -> vector<8x512xf32>
    %55 = arith.addf %52, %54 : vector<8x512xf32>
    %56 = vector.extract_strided_slice %55 {offsets = [0, 0], sizes = [8, 128], strides = [1, 1]} : vector<8x512xf32> to vector<8x128xf32>
    %57 = arith.negf %56 : vector<8x128xf32>
    %58 = math.exp %57 : vector<8x128xf32>
    %cst_28 = arith.constant 1.000000e+00 : f32
    %59 = vector.broadcast %cst_28 : f32 to vector<8x128xf32>
    %60 = arith.addf %59, %58 : vector<8x128xf32>
    %61 = arith.divf %59, %60 : vector<8x128xf32>
    %62 = vector.extract_strided_slice %55 {offsets = [0, 128], sizes = [8, 128], strides = [1, 1]} : vector<8x512xf32> to vector<8x128xf32>
    %63 = arith.negf %62 : vector<8x128xf32>
    %64 = math.exp %63 : vector<8x128xf32>
    %cst_29 = arith.constant 1.000000e+00 : f32
    %65 = vector.broadcast %cst_29 : f32 to vector<8x128xf32>
    %66 = arith.addf %65, %64 : vector<8x128xf32>
    %67 = arith.divf %65, %66 : vector<8x128xf32>
    %68 = vector.extract_strided_slice %55 {offsets = [0, 256], sizes = [8, 128], strides = [1, 1]} : vector<8x512xf32> to vector<8x128xf32>
    %69 = math.tanh %68 : vector<8x128xf32>
    %70 = vector.extract_strided_slice %55 {offsets = [0, 384], sizes = [8, 128], strides = [1, 1]} : vector<8x512xf32> to vector<8x128xf32>
    %71 = arith.negf %70 : vector<8x128xf32>
    %72 = math.exp %71 : vector<8x128xf32>
    %cst_30 = arith.constant 1.000000e+00 : f32
    %73 = vector.broadcast %cst_30 : f32 to vector<8x128xf32>
    %74 = arith.addf %73, %72 : vector<8x128xf32>
    %75 = arith.divf %73, %74 : vector<8x128xf32>
    %76 = arith.mulf %67, %43 : vector<8x128xf32>
    %77 = arith.mulf %61, %69 : vector<8x128xf32>
    %78 = arith.addf %76, %77 : vector<8x128xf32>
    %79 = math.tanh %78 : vector<8x128xf32>
    %80 = arith.mulf %75, %79 : vector<8x128xf32>
    %81 = arith.index_cast %c1_i32 : i32 to index
    %c0_31 = arith.constant 0 : index
    %c0_32 = arith.constant 0 : index
    %82 = vector.load %arg10[%81, %c0_31, %c0_32] : memref<8x8x128xf32, #tpu.memory_space<vmem>>, vector<1x8x128xf32>
    %83 = vector.shape_cast %82 : vector<1x8x128xf32> to vector<8x128xf32>
    %84 = vector.shape_cast %80 : vector<8x128xf32> to vector<1x8x128xf32>
    tpu.vector_store %arg10[%81, %c0_31, %c0_32], %84 {strides = array<i32>} : memref<8x8x128xf32, #tpu.memory_space<vmem>>, vector<1x8x128xf32>,
    %c2_i32 = arith.constant 2 : i32
    %85 = arith.index_cast %c2_i32 : i32 to index
    %c0_33 = arith.constant 0 : index
    %c0_34 = arith.constant 0 : index
    %86 = vector.load %arg9[%85, %c0_33, %c0_34] : memref<8x8x512xf32, #tpu.memory_space<vmem>>, vector<1x8x512xf32>
    %87 = vector.shape_cast %86 : vector<1x8x512xf32> to vector<8x512xf32>
    %88 = arith.truncf %80 : vector<8x128xf32> to vector<8x128xbf16>
    %cst_35 = arith.constant dense<0.000000e+00> : vector<8x512xf32>
    %89 = tpu.matmul %88, %12, %cst_35 {dimension_numbers = #tpu.dot_dimension_numbers<[1], [0], [0], [1], [0, 0, 1, 1], [], []>} : vector<8x128xbf16>, vector<128x512xbf16>, vector<8x512xf32> -> vector<8x512xf32>
    %90 = arith.addf %87, %89 : vector<8x512xf32>
    %91 = vector.extract_strided_slice %90 {offsets = [0, 0], sizes = [8, 128], strides = [1, 1]} : vector<8x512xf32> to vector<8x128xf32>
    %92 = arith.negf %91 : vector<8x128xf32>
    %93 = math.exp %92 : vector<8x128xf32>
    %cst_36 = arith.constant 1.000000e+00 : f32
    %94 = vector.broadcast %cst_36 : f32 to vector<8x128xf32>
    %95 = arith.addf %94, %93 : vector<8x128xf32>
    %96 = arith.divf %94, %95 : vector<8x128xf32>
    %97 = vector.extract_strided_slice %90 {offsets = [0, 128], sizes = [8, 128], strides = [1, 1]} : vector<8x512xf32> to vector<8x128xf32>
    %98 = arith.negf %97 : vector<8x128xf32>
    %99 = math.exp %98 : vector<8x128xf32>
    %cst_37 = arith.constant 1.000000e+00 : f32
    %100 = vector.broadcast %cst_37 : f32 to vector<8x128xf32>
    %101 = arith.addf %100, %99 : vector<8x128xf32>
    %102 = arith.divf %100, %101 : vector<8x128xf32>
    %103 = vector.extract_strided_slice %90 {offsets = [0, 256], sizes = [8, 128], strides = [1, 1]} : vector<8x512xf32> to vector<8x128xf32>
    %104 = math.tanh %103 : vector<8x128xf32>
    %105 = vector.extract_strided_slice %90 {offsets = [0, 384], sizes = [8, 128], strides = [1, 1]} : vector<8x512xf32> to vector<8x128xf32>
    %106 = arith.negf %105 : vector<8x128xf32>
    %107 = math.exp %106 : vector<8x128xf32>
    %cst_38 = arith.constant 1.000000e+00 : f32
    %108 = vector.broadcast %cst_38 : f32 to vector<8x128xf32>
    %109 = arith.addf %108, %107 : vector<8x128xf32>
    %110 = arith.divf %108, %109 : vector<8x128xf32>
    %111 = arith.mulf %102, %78 : vector<8x128xf32>
    %112 = arith.mulf %96, %104 : vector<8x128xf32>
    %113 = arith.addf %111, %112 : vector<8x128xf32>
    %114 = math.tanh %113 : vector<8x128xf32>
    %115 = arith.mulf %110, %114 : vector<8x128xf32>
    %116 = arith.index_cast %c2_i32 : i32 to index
    %c0_39 = arith.constant 0 : index
    %c0_40 = arith.constant 0 : index
    %117 = vector.load %arg10[%116, %c0_39, %c0_40] : memref<8x8x128xf32, #tpu.memory_space<vmem>>, vector<1x8x128xf32>
    %118 = vector.shape_cast %117 : vector<1x8x128xf32> to vector<8x128xf32>
    %119 = vector.shape_cast %115 : vector<8x128xf32> to vector<1x8x128xf32>
    tpu.vector_store %arg10[%116, %c0_39, %c0_40], %119 {strides = array<i32>} : memref<8x8x128xf32, #tpu.memory_space<vmem>>, vector<1x8x128xf32>,
    %c3_i32 = arith.constant 3 : i32
    %120 = arith.index_cast %c3_i32 : i32 to index
    %c0_41 = arith.constant 0 : index
    %c0_42 = arith.constant 0 : index
    %121 = vector.load %arg9[%120, %c0_41, %c0_42] : memref<8x8x512xf32, #tpu.memory_space<vmem>>, vector<1x8x512xf32>
    %122 = vector.shape_cast %121 : vector<1x8x512xf32> to vector<8x512xf32>
    %123 = arith.truncf %115 : vector<8x128xf32> to vector<8x128xbf16>
    %cst_43 = arith.constant dense<0.000000e+00> : vector<8x512xf32>
    %124 = tpu.matmul %123, %12, %cst_43 {dimension_numbers = #tpu.dot_dimension_numbers<[1], [0], [0], [1], [0, 0, 1, 1], [], []>} : vector<8x128xbf16>, vector<128x512xbf16>, vector<8x512xf32> -> vector<8x512xf32>
    %125 = arith.addf %122, %124 : vector<8x512xf32>
    %126 = vector.extract_strided_slice %125 {offsets = [0, 0], sizes = [8, 128], strides = [1, 1]} : vector<8x512xf32> to vector<8x128xf32>
    %127 = arith.negf %126 : vector<8x128xf32>
    %128 = math.exp %127 : vector<8x128xf32>
    %cst_44 = arith.constant 1.000000e+00 : f32
    %129 = vector.broadcast %cst_44 : f32 to vector<8x128xf32>
    %130 = arith.addf %129, %128 : vector<8x128xf32>
    %131 = arith.divf %129, %130 : vector<8x128xf32>
    %132 = vector.extract_strided_slice %125 {offsets = [0, 128], sizes = [8, 128], strides = [1, 1]} : vector<8x512xf32> to vector<8x128xf32>
    %133 = arith.negf %132 : vector<8x128xf32>
    %134 = math.exp %133 : vector<8x128xf32>
    %cst_45 = arith.constant 1.000000e+00 : f32
    %135 = vector.broadcast %cst_45 : f32 to vector<8x128xf32>
    %136 = arith.addf %135, %134 : vector<8x128xf32>
    %137 = arith.divf %135, %136 : vector<8x128xf32>
    %138 = vector.extract_strided_slice %125 {offsets = [0, 256], sizes = [8, 128], strides = [1, 1]} : vector<8x512xf32> to vector<8x128xf32>
    %139 = math.tanh %138 : vector<8x128xf32>
    %140 = vector.extract_strided_slice %125 {offsets = [0, 384], sizes = [8, 128], strides = [1, 1]} : vector<8x512xf32> to vector<8x128xf32>
    %141 = arith.negf %140 : vector<8x128xf32>
    %142 = math.exp %141 : vector<8x128xf32>
    %cst_46 = arith.constant 1.000000e+00 : f32
    %143 = vector.broadcast %cst_46 : f32 to vector<8x128xf32>
    %144 = arith.addf %143, %142 : vector<8x128xf32>
    %145 = arith.divf %143, %144 : vector<8x128xf32>
    %146 = arith.mulf %137, %113 : vector<8x128xf32>
    %147 = arith.mulf %131, %139 : vector<8x128xf32>
    %148 = arith.addf %146, %147 : vector<8x128xf32>
    %149 = math.tanh %148 : vector<8x128xf32>
    %150 = arith.mulf %145, %149 : vector<8x128xf32>
    %151 = arith.index_cast %c3_i32 : i32 to index
    %c0_47 = arith.constant 0 : index
    %c0_48 = arith.constant 0 : index
    %152 = vector.load %arg10[%151, %c0_47, %c0_48] : memref<8x8x128xf32, #tpu.memory_space<vmem>>, vector<1x8x128xf32>
    %153 = vector.shape_cast %152 : vector<1x8x128xf32> to vector<8x128xf32>
    %154 = vector.shape_cast %150 : vector<8x128xf32> to vector<1x8x128xf32>
    tpu.vector_store %arg10[%151, %c0_47, %c0_48], %154 {strides = array<i32>} : memref<8x8x128xf32, #tpu.memory_space<vmem>>, vector<1x8x128xf32>,
    %c4_i32 = arith.constant 4 : i32
    %155 = arith.index_cast %c4_i32 : i32 to index
    %c0_49 = arith.constant 0 : index
    %c0_50 = arith.constant 0 : index
    %156 = vector.load %arg9[%155, %c0_49, %c0_50] : memref<8x8x512xf32, #tpu.memory_space<vmem>>, vector<1x8x512xf32>
    %157 = vector.shape_cast %156 : vector<1x8x512xf32> to vector<8x512xf32>
    %158 = arith.truncf %150 : vector<8x128xf32> to vector<8x128xbf16>
    %cst_51 = arith.constant dense<0.000000e+00> : vector<8x512xf32>
    %159 = tpu.matmul %158, %12, %cst_51 {dimension_numbers = #tpu.dot_dimension_numbers<[1], [0], [0], [1], [0, 0, 1, 1], [], []>} : vector<8x128xbf16>, vector<128x512xbf16>, vector<8x512xf32> -> vector<8x512xf32>
    %160 = arith.addf %157, %159 : vector<8x512xf32>
    %161 = vector.extract_strided_slice %160 {offsets = [0, 0], sizes = [8, 128], strides = [1, 1]} : vector<8x512xf32> to vector<8x128xf32>
    %162 = arith.negf %161 : vector<8x128xf32>
    %163 = math.exp %162 : vector<8x128xf32>
    %cst_52 = arith.constant 1.000000e+00 : f32
    %164 = vector.broadcast %cst_52 : f32 to vector<8x128xf32>
    %165 = arith.addf %164, %163 : vector<8x128xf32>
    %166 = arith.divf %164, %165 : vector<8x128xf32>
    %167 = vector.extract_strided_slice %160 {offsets = [0, 128], sizes = [8, 128], strides = [1, 1]} : vector<8x512xf32> to vector<8x128xf32>
    %168 = arith.negf %167 : vector<8x128xf32>
    %169 = math.exp %168 : vector<8x128xf32>
    %cst_53 = arith.constant 1.000000e+00 : f32
    %170 = vector.broadcast %cst_53 : f32 to vector<8x128xf32>
    %171 = arith.addf %170, %169 : vector<8x128xf32>
    %172 = arith.divf %170, %171 : vector<8x128xf32>
    %173 = vector.extract_strided_slice %160 {offsets = [0, 256], sizes = [8, 128], strides = [1, 1]} : vector<8x512xf32> to vector<8x128xf32>
    %174 = math.tanh %173 : vector<8x128xf32>
    %175 = vector.extract_strided_slice %160 {offsets = [0, 384], sizes = [8, 128], strides = [1, 1]} : vector<8x512xf32> to vector<8x128xf32>
    %176 = arith.negf %175 : vector<8x128xf32>
    %177 = math.exp %176 : vector<8x128xf32>
    %cst_54 = arith.constant 1.000000e+00 : f32
    %178 = vector.broadcast %cst_54 : f32 to vector<8x128xf32>
    %179 = arith.addf %178, %177 : vector<8x128xf32>
    %180 = arith.divf %178, %179 : vector<8x128xf32>
    %181 = arith.mulf %172, %148 : vector<8x128xf32>
    %182 = arith.mulf %166, %174 : vector<8x128xf32>
    %183 = arith.addf %181, %182 : vector<8x128xf32>
    %184 = math.tanh %183 : vector<8x128xf32>
    %185 = arith.mulf %180, %184 : vector<8x128xf32>
    %186 = arith.index_cast %c4_i32 : i32 to index
    %c0_55 = arith.constant 0 : index
    %c0_56 = arith.constant 0 : index
    %187 = vector.load %arg10[%186, %c0_55, %c0_56] : memref<8x8x128xf32, #tpu.memory_space<vmem>>, vector<1x8x128xf32>
    %188 = vector.shape_cast %187 : vector<1x8x128xf32> to vector<8x128xf32>
    %189 = vector.shape_cast %185 : vector<8x128xf32> to vector<1x8x128xf32>
    tpu.vector_store %arg10[%186, %c0_55, %c0_56], %189 {strides = array<i32>} : memref<8x8x128xf32, #tpu.memory_space<vmem>>, vector<1x8x128xf32>,
    %c5_i32 = arith.constant 5 : i32
    %190 = arith.index_cast %c5_i32 : i32 to index
    %c0_57 = arith.constant 0 : index
    %c0_58 = arith.constant 0 : index
    %191 = vector.load %arg9[%190, %c0_57, %c0_58] : memref<8x8x512xf32, #tpu.memory_space<vmem>>, vector<1x8x512xf32>
    %192 = vector.shape_cast %191 : vector<1x8x512xf32> to vector<8x512xf32>
    %193 = arith.truncf %185 : vector<8x128xf32> to vector<8x128xbf16>
    %cst_59 = arith.constant dense<0.000000e+00> : vector<8x512xf32>
    %194 = tpu.matmul %193, %12, %cst_59 {dimension_numbers = #tpu.dot_dimension_numbers<[1], [0], [0], [1], [0, 0, 1, 1], [], []>} : vector<8x128xbf16>, vector<128x512xbf16>, vector<8x512xf32> -> vector<8x512xf32>
    %195 = arith.addf %192, %194 : vector<8x512xf32>
    %196 = vector.extract_strided_slice %195 {offsets = [0, 0], sizes = [8, 128], strides = [1, 1]} : vector<8x512xf32> to vector<8x128xf32>
    %197 = arith.negf %196 : vector<8x128xf32>
    %198 = math.exp %197 : vector<8x128xf32>
    %cst_60 = arith.constant 1.000000e+00 : f32
    %199 = vector.broadcast %cst_60 : f32 to vector<8x128xf32>
    %200 = arith.addf %199, %198 : vector<8x128xf32>
    %201 = arith.divf %199, %200 : vector<8x128xf32>
    %202 = vector.extract_strided_slice %195 {offsets = [0, 128], sizes = [8, 128], strides = [1, 1]} : vector<8x512xf32> to vector<8x128xf32>
    %203 = arith.negf %202 : vector<8x128xf32>
    %204 = math.exp %203 : vector<8x128xf32>
    %cst_61 = arith.constant 1.000000e+00 : f32
    %205 = vector.broadcast %cst_61 : f32 to vector<8x128xf32>
    %206 = arith.addf %205, %204 : vector<8x128xf32>
    %207 = arith.divf %205, %206 : vector<8x128xf32>
    %208 = vector.extract_strided_slice %195 {offsets = [0, 256], sizes = [8, 128], strides = [1, 1]} : vector<8x512xf32> to vector<8x128xf32>
    %209 = math.tanh %208 : vector<8x128xf32>
    %210 = vector.extract_strided_slice %195 {offsets = [0, 384], sizes = [8, 128], strides = [1, 1]} : vector<8x512xf32> to vector<8x128xf32>
    %211 = arith.negf %210 : vector<8x128xf32>
    %212 = math.exp %211 : vector<8x128xf32>
    %cst_62 = arith.constant 1.000000e+00 : f32
    %213 = vector.broadcast %cst_62 : f32 to vector<8x128xf32>
    %214 = arith.addf %213, %212 : vector<8x128xf32>
    %215 = arith.divf %213, %214 : vector<8x128xf32>
    %216 = arith.mulf %207, %183 : vector<8x128xf32>
    %217 = arith.mulf %201, %209 : vector<8x128xf32>
    %218 = arith.addf %216, %217 : vector<8x128xf32>
    %219 = math.tanh %218 : vector<8x128xf32>
    %220 = arith.mulf %215, %219 : vector<8x128xf32>
    %221 = arith.index_cast %c5_i32 : i32 to index
    %c0_63 = arith.constant 0 : index
    %c0_64 = arith.constant 0 : index
    %222 = vector.load %arg10[%221, %c0_63, %c0_64] : memref<8x8x128xf32, #tpu.memory_space<vmem>>, vector<1x8x128xf32>
    %223 = vector.shape_cast %222 : vector<1x8x128xf32> to vector<8x128xf32>
    %224 = vector.shape_cast %220 : vector<8x128xf32> to vector<1x8x128xf32>
    tpu.vector_store %arg10[%221, %c0_63, %c0_64], %224 {strides = array<i32>} : memref<8x8x128xf32, #tpu.memory_space<vmem>>, vector<1x8x128xf32>,
    %c6_i32 = arith.constant 6 : i32
    %225 = arith.index_cast %c6_i32 : i32 to index
    %c0_65 = arith.constant 0 : index
    %c0_66 = arith.constant 0 : index
    %226 = vector.load %arg9[%225, %c0_65, %c0_66] : memref<8x8x512xf32, #tpu.memory_space<vmem>>, vector<1x8x512xf32>
    %227 = vector.shape_cast %226 : vector<1x8x512xf32> to vector<8x512xf32>
    %228 = arith.truncf %220 : vector<8x128xf32> to vector<8x128xbf16>
    %cst_67 = arith.constant dense<0.000000e+00> : vector<8x512xf32>
    %229 = tpu.matmul %228, %12, %cst_67 {dimension_numbers = #tpu.dot_dimension_numbers<[1], [0], [0], [1], [0, 0, 1, 1], [], []>} : vector<8x128xbf16>, vector<128x512xbf16>, vector<8x512xf32> -> vector<8x512xf32>
    %230 = arith.addf %227, %229 : vector<8x512xf32>
    %231 = vector.extract_strided_slice %230 {offsets = [0, 0], sizes = [8, 128], strides = [1, 1]} : vector<8x512xf32> to vector<8x128xf32>
    %232 = arith.negf %231 : vector<8x128xf32>
    %233 = math.exp %232 : vector<8x128xf32>
    %cst_68 = arith.constant 1.000000e+00 : f32
    %234 = vector.broadcast %cst_68 : f32 to vector<8x128xf32>
    %235 = arith.addf %234, %233 : vector<8x128xf32>
    %236 = arith.divf %234, %235 : vector<8x128xf32>
    %237 = vector.extract_strided_slice %230 {offsets = [0, 128], sizes = [8, 128], strides = [1, 1]} : vector<8x512xf32> to vector<8x128xf32>
    %238 = arith.negf %237 : vector<8x128xf32>
    %239 = math.exp %238 : vector<8x128xf32>
    %cst_69 = arith.constant 1.000000e+00 : f32
    %240 = vector.broadcast %cst_69 : f32 to vector<8x128xf32>
    %241 = arith.addf %240, %239 : vector<8x128xf32>
    %242 = arith.divf %240, %241 : vector<8x128xf32>
    %243 = vector.extract_strided_slice %230 {offsets = [0, 256], sizes = [8, 128], strides = [1, 1]} : vector<8x512xf32> to vector<8x128xf32>
    %244 = math.tanh %243 : vector<8x128xf32>
    %245 = vector.extract_strided_slice %230 {offsets = [0, 384], sizes = [8, 128], strides = [1, 1]} : vector<8x512xf32> to vector<8x128xf32>
    %246 = arith.negf %245 : vector<8x128xf32>
    %247 = math.exp %246 : vector<8x128xf32>
    %cst_70 = arith.constant 1.000000e+00 : f32
    %248 = vector.broadcast %cst_70 : f32 to vector<8x128xf32>
    %249 = arith.addf %248, %247 : vector<8x128xf32>
    %250 = arith.divf %248, %249 : vector<8x128xf32>
    %251 = arith.mulf %242, %218 : vector<8x128xf32>
    %252 = arith.mulf %236, %244 : vector<8x128xf32>
    %253 = arith.addf %251, %252 : vector<8x128xf32>
    %254 = math.tanh %253 : vector<8x128xf32>
    %255 = arith.mulf %250, %254 : vector<8x128xf32>
    %256 = arith.index_cast %c6_i32 : i32 to index
    %c0_71 = arith.constant 0 : index
    %c0_72 = arith.constant 0 : index
    %257 = vector.load %arg10[%256, %c0_71, %c0_72] : memref<8x8x128xf32, #tpu.memory_space<vmem>>, vector<1x8x128xf32>
    %258 = vector.shape_cast %257 : vector<1x8x128xf32> to vector<8x128xf32>
    %259 = vector.shape_cast %255 : vector<8x128xf32> to vector<1x8x128xf32>
    tpu.vector_store %arg10[%256, %c0_71, %c0_72], %259 {strides = array<i32>} : memref<8x8x128xf32, #tpu.memory_space<vmem>>, vector<1x8x128xf32>,
    %c7_i32 = arith.constant 7 : i32
    %260 = arith.index_cast %c7_i32 : i32 to index
    %c0_73 = arith.constant 0 : index
    %c0_74 = arith.constant 0 : index
    %261 = vector.load %arg9[%260, %c0_73, %c0_74] : memref<8x8x512xf32, #tpu.memory_space<vmem>>, vector<1x8x512xf32>
    %262 = vector.shape_cast %261 : vector<1x8x512xf32> to vector<8x512xf32>
    %263 = arith.truncf %255 : vector<8x128xf32> to vector<8x128xbf16>
    %cst_75 = arith.constant dense<0.000000e+00> : vector<8x512xf32>
    %264 = tpu.matmul %263, %12, %cst_75 {dimension_numbers = #tpu.dot_dimension_numbers<[1], [0], [0], [1], [0, 0, 1, 1], [], []>} : vector<8x128xbf16>, vector<128x512xbf16>, vector<8x512xf32> -> vector<8x512xf32>
    %265 = arith.addf %262, %264 : vector<8x512xf32>
    %266 = vector.extract_strided_slice %265 {offsets = [0, 0], sizes = [8, 128], strides = [1, 1]} : vector<8x512xf32> to vector<8x128xf32>
    %267 = arith.negf %266 : vector<8x128xf32>
    %268 = math.exp %267 : vector<8x128xf32>
    %cst_76 = arith.constant 1.000000e+00 : f32
    %269 = vector.broadcast %cst_76 : f32 to vector<8x128xf32>
    %270 = arith.addf %269, %268 : vector<8x128xf32>
    %271 = arith.divf %269, %270 : vector<8x128xf32>
    %272 = vector.extract_strided_slice %265 {offsets = [0, 128], sizes = [8, 128], strides = [1, 1]} : vector<8x512xf32> to vector<8x128xf32>
    %273 = arith.negf %272 : vector<8x128xf32>
    %274 = math.exp %273 : vector<8x128xf32>
    %cst_77 = arith.constant 1.000000e+00 : f32
    %275 = vector.broadcast %cst_77 : f32 to vector<8x128xf32>
    %276 = arith.addf %275, %274 : vector<8x128xf32>
    %277 = arith.divf %275, %276 : vector<8x128xf32>
    %278 = vector.extract_strided_slice %265 {offsets = [0, 256], sizes = [8, 128], strides = [1, 1]} : vector<8x512xf32> to vector<8x128xf32>
    %279 = math.tanh %278 : vector<8x128xf32>
    %280 = vector.extract_strided_slice %265 {offsets = [0, 384], sizes = [8, 128], strides = [1, 1]} : vector<8x512xf32> to vector<8x128xf32>
    %281 = arith.negf %280 : vector<8x128xf32>
    %282 = math.exp %281 : vector<8x128xf32>
    %cst_78 = arith.constant 1.000000e+00 : f32
    %283 = vector.broadcast %cst_78 : f32 to vector<8x128xf32>
    %284 = arith.addf %283, %282 : vector<8x128xf32>
    %285 = arith.divf %283, %284 : vector<8x128xf32>
    %286 = arith.mulf %277, %253 : vector<8x128xf32>
    %287 = arith.mulf %271, %279 : vector<8x128xf32>
    %288 = arith.addf %286, %287 : vector<8x128xf32>
    %289 = math.tanh %288 : vector<8x128xf32>
    %290 = arith.mulf %285, %289 : vector<8x128xf32>
    %291 = arith.index_cast %c7_i32 : i32 to index
    %c0_79 = arith.constant 0 : index
    %c0_80 = arith.constant 0 : index
    %292 = vector.load %arg10[%291, %c0_79, %c0_80] : memref<8x8x128xf32, #tpu.memory_space<vmem>>, vector<1x8x128xf32>
    %293 = vector.shape_cast %292 : vector<1x8x128xf32> to vector<8x128xf32>
    %294 = vector.shape_cast %290 : vector<8x128xf32> to vector<1x8x128xf32>
    tpu.vector_store %arg10[%291, %c0_79, %c0_80], %294 {strides = array<i32>} : memref<8x8x128xf32, #tpu.memory_space<vmem>>, vector<1x8x128xf32>,
    %c8_i32 = arith.constant 8 : i32
    %c0_81 = arith.constant 0 : index
    %c0_82 = arith.constant 0 : index
    %295 = vector.load %arg7[%c0_81, %c0_82] : memref<8x128xf32, #tpu.memory_space<vmem>>, vector<8x128xf32>
    tpu.vector_store %arg7[%c0_81, %c0_82], %290 {strides = array<i32>} : memref<8x128xf32, #tpu.memory_space<vmem>>, vector<8x128xf32>,
    %c0_83 = arith.constant 0 : index
    %c0_84 = arith.constant 0 : index
    %296 = vector.load %arg8[%c0_83, %c0_84] : memref<8x128xf32, #tpu.memory_space<vmem>>, vector<8x128xf32>
    tpu.vector_store %arg8[%c0_83, %c0_84], %288 {strides = array<i32>} : memref<8x128xf32, #tpu.memory_space<vmem>>, vector<8x128xf32>,
    %c0_85 = arith.constant 0 : index
    %c0_86 = arith.constant 0 : index
    %c0_87 = arith.constant 0 : index
    %297 = vector.load %arg10[%c0_85, %c0_86, %c0_87] : memref<8x8x128xf32, #tpu.memory_space<vmem>>, vector<8x8x128xf32>
    %298 = tpu.transpose %297, [1, 0, 2] : vector<8x8x128xf32> -> vector<8x8x128xf32>
    %c0_88 = arith.constant 0 : index
    %c0_89 = arith.constant 0 : index
    %c0_90 = arith.constant 0 : index
    %299 = vector.load %arg6[%c0_88, %c0_89, %c0_90] : memref<8x8x128xf32, #tpu.memory_space<vmem>>, vector<8x8x128xf32>
    tpu.vector_store %arg6[%c0_88, %c0_89, %c0_90], %298 {strides = array<i32>} : memref<8x8x128xf32, #tpu.memory_space<vmem>>, vector<8x8x128xf32>,
    return
  }
  func.func @transform_0(%arg0: i32, %arg1: i32) -> (i32, i32, i32) {
    %c0_i32 = arith.constant 0 : i32
    %c0_i32_0 = arith.constant 0 : i32
    return %arg1, %arg0, %c0_i32 : i32, i32, i32
  }
  func.func @transform_1(%arg0: i32, %arg1: i32) -> (i32, i32) {
    %c0_i32 = arith.constant 0 : i32
    %c0_i32_0 = arith.constant 0 : i32
    %c0_i32_1 = arith.constant 0 : i32
    return %c0_i32, %c0_i32_0 : i32, i32
  }
  func.func @transform_2(%arg0: i32, %arg1: i32) -> (i32, i32) {
    %c0_i32 = arith.constant 0 : i32
    %c0_i32_0 = arith.constant 0 : i32
    %c0_i32_1 = arith.constant 0 : i32
    return %c0_i32, %c0_i32_0 : i32, i32
  }
  func.func @transform_3(%arg0: i32, %arg1: i32) -> (i32, i32) {
    %c0_i32 = arith.constant 0 : i32
    %c0_i32_0 = arith.constant 0 : i32
    %c0_i32_1 = arith.constant 0 : i32
    return %c0_i32, %c0_i32_0 : i32, i32
  }
  func.func @transform_4(%arg0: i32, %arg1: i32) -> (i32, i32, i32) {
    %c0_i32 = arith.constant 0 : i32
    %c0_i32_0 = arith.constant 0 : i32
    return %arg0, %arg1, %c0_i32 : i32, i32, i32
  }
  func.func @transform_5(%arg0: i32, %arg1: i32) -> (i32, i32) {
    %c0_i32 = arith.constant 0 : i32
    %c0_i32_0 = arith.constant 0 : i32
    return %arg0, %c0_i32 : i32, i32
  }
  func.func @transform_6(%arg0: i32, %arg1: i32) -> (i32, i32) {
    %c0_i32 = arith.constant 0 : i32
    %c0_i32_0 = arith.constant 0 : i32
    return %arg0, %c0_i32 : i32, i32
  }
}

</mosaic_0001>

<bundles_post_ra>
// kernel: tpu_custom_call.1
= control target key start
LH: loop header
LB: loop body
LE: loop exit
PB: predicated region body
PF: predicated region fallthrough
CT: control target
= control target key end

     0   :  { %12 = vsyncpa [#allocation5], 0  ;;  %s2922_s0 = inlined_call_operand.hbm [shape: bf16[8,8,32], index: 0, kind: input, shape index: {}]   ;;  %s2923_s1 = inlined_call_operand.hbm [shape: bf16[32,512], index: 1, kind: input, shape index: {}]   ;;  %s2924_s2 = inlined_call_operand.hbm [shape: bf16[128,512], index: 2, kind: input, shape index: {}]   ;;  %s2925_s3 = inlined_call_operand.vmem [shape: f32[1,512], index: 3, kind: input, shape index: {}]   ;;  %s2926_s4 = inlined_call_operand.hbm [shape: f32[8,8,128], index: 4, kind: output, shape index: {0}]   ;;  %s2927_s5 = inlined_call_operand.hbm [shape: f32[8,128], index: 5, kind: output, shape index: {1}]   ;;  %s2928_s6 = inlined_call_operand.hbm [shape: f32[8,128], index: 6, kind: output, shape index: {2}]  }
   0x1   :  { %13 = vsyncpa [#allocation8], 0 }
   0x2   :  { %14 = vsyncpa [#allocation6], 0 }
   0x3   :  { %15 = vsyncpa [#allocation12], 0  ;;  %s2150_s21 = smov [#allocation7]   ;;  %s2010_s25 = scalar_lea.hbm %s2923_s1, 1024 }
   0x4   :  { %s33_s22 = sshll.u32 %s2150_s21, 4  ;;  %p2011_p0 = scmp.ne.s32.totalorder %s2923_s1, %s2010_s25  ;;  %s34_s22 = int_to_ptr.vmem [resolvable:$true] %s33_s22 }
   0x5   :  { %p2014_p1 = scmp.lt.u32.totalorder %s2010_s25, %s2923_s1 }
   0x7   :  { %p2016_p2 = pnand %p2014_p1, %p2011_p0 }
   0x9   :  { %2019 = shalt.err (!%p2016_p2)
}
   0xa   :  { %s2020_s30 = scalar_lea.vmem %s34_s22, 1024  ;;  %p2025_p4 = scmp.lt.s32.totalorder %s34_s22, %s34_s22 }
   0xb   :  { %p2021_p3 = scmp.ne.s32.totalorder %s34_s22, %s2020_s30  ;;  %p2026_p5 = scmp.lt.s32.totalorder %s2020_s30, %s2020_s30 }
   0xd   :  { %p2027_p6 = por %p2026_p5, %p2025_p4 }
   0xf   :  { %p2028_p7 = pnand %p2027_p6, %p2021_p3 }
  0x11   :  { %2031 = shalt.err (!%p2028_p7)
}
  0x12   :  { %s2151_s7 = smov 256   ;;  %s2152_s8 = smov 16  }
  0x13   :  { %39 = dma.hbm_to_vmem [thread:$0]  %s2923_s1, 1024, %s34_s22, [#allocation8], %s2151_s7, %s2151_s7, %s2152_s8  }
  0x14   :  { %s2153_s11 = smov [#allocation4]   ;;  %s2032_s15 = scalar_lea.hbm %s2922_s0, 512 }
  0x15   :  { %s21_s12 = sshll.u32 %s2153_s11, 4  ;;  %p2033_p8 = scmp.ne.s32.totalorder %s2922_s0, %s2032_s15  ;;  %s22_s12 = int_to_ptr.vmem [resolvable:$true] %s21_s12 }
  0x16   :  { %p2036_p9 = scmp.lt.u32.totalorder %s2032_s15, %s2922_s0 }
  0x18   :  { %p2038_p10 = pnand %p2036_p9, %p2033_p8 }
  0x1a   :  { %2041 = shalt.err (!%p2038_p10)
}
  0x1b   :  { %s2042_s20 = scalar_lea.vmem %s22_s12, 512  ;;  %p2047_p12 = scmp.lt.s32.totalorder %s22_s12, %s22_s12 }
  0x1c   :  { %p2043_p11 = scmp.ne.s32.totalorder %s22_s12, %s2042_s20  ;;  %p2048_p13 = scmp.lt.s32.totalorder %s2042_s20, %s2042_s20 }
  0x1e   :  { %p2049_p0 = por %p2048_p13, %p2047_p12 }
  0x20   :  { %p2050_p1 = pnand %p2049_p0, %p2043_p11 }
  0x22   :  { %2053 = shalt.err (!%p2050_p1)
}
  0x23   :  { %s2154_s1 = smov 64   ;;  %s2155_s21 = smov 4  }
  0x24   :  { %27 = dma.hbm_to_vmem [thread:$0]  %s2922_s0, 512, %s22_s12, [#allocation5], %s2154_s1, %s2154_s1, %s2155_s21  }
  0x25   :  { %s2156_s24 = smov [#allocation9]   ;;  %s2054_s28 = scalar_lea.hbm %s2924_s2, 4096 }
  0x26   :  { %s45_s25 = sshll.u32 %s2156_s24, 4  ;;  %p2055_p2 = scmp.ne.s32.totalorder %s2924_s2, %s2054_s28  ;;  %s46_s25 = int_to_ptr.vmem [resolvable:$true] %s45_s25 }
  0x27   :  { %p2058_p3 = scmp.lt.u32.totalorder %s2054_s28, %s2924_s2 }
  0x29   :  { %p2060_p4 = pnand %p2058_p3, %p2055_p2 }
  0x2b   :  { %2063 = shalt.err (!%p2060_p4)
}
  0x2c   :  { %s2064_s11 = scalar_lea.vmem %s46_s25, 4096  ;;  %p2069_p6 = scmp.lt.s32.totalorder %s46_s25, %s46_s25 }
  0x2d   :  { %p2065_p5 = scmp.ne.s32.totalorder %s46_s25, %s2064_s11  ;;  %p2070_p7 = scmp.lt.s32.totalorder %s2064_s11, %s2064_s11 }
  0x2f   :  { %p2071_p8 = por %p2070_p7, %p2069_p6 }
  0x31   :  { %p2072_p9 = pnand %p2071_p8, %p2065_p5 }
  0x33   :  { %2075 = shalt.err (!%p2072_p9)
}
  0x34   :  { %51 = dma.hbm_to_vmem [thread:$0]  %s2924_s2, 4096, %s46_s25, [#allocation8], %s2151_s7, %s2151_s7, %s2152_s8  }
  0x35   :  { %2142 = dma.done.wait [#allocation5], 512  }
  0x36   :  { %2143 = vsyncadd [#allocation5], 4294966784 }
  0x37   :  { %2144 = dma.done.wait [#allocation8], 5120  }
  0x38   :  { %2145 = vsyncadd [#allocation8], 4294962176  ;;  %v2929_v0 = vmov 0   ;;  %v1786_v1 = vld [vmem:[#allocation7 + $0x4] ss:$16 sps:$4 sm:$0xff]   ;;  %vm168_vm0 = vcmask 261120   ;;  %v88_v46 = vlaneseq }
  0x39   :  { %213 = vmatprep.mubr.bf16.mxu0 %v2929_v0  ;;  %286 = vmatprep.mubr.bf16.mxu1 %v2929_v0  ;;  %v1788_v2 = vld [vmem:[#allocation7 + $0xc] ss:$16 sps:$4 sm:$0xff]   ;;  %v1790_v3 = vld [vmem:[#allocation7] ss:$16 sps:$4 sm:$0xff]   ;;  %v1791_v4 = vld [vmem:[#allocation7 + $0x8] ss:$16 sps:$4 sm:$0xff]  }
  0x3a   :  { %181 = vmatprep.subr.bf16.mxu0 %v1786_v1  ;;  %254 = vmatprep.subr.bf16.mxu1 %v1788_v2  ;;  %v1792_v5 = vld [vmem:[#allocation7 + $0x24] ss:$16 sps:$4 sm:$0xff]   ;;  %v1794_v6 = vld [vmem:[#allocation7 + $0x2c] ss:$16 sps:$4 sm:$0xff]   ;;  %v1796_v7 = vld [vmem:[#allocation7 + $0x20] ss:$16 sps:$4 sm:$0xff]  }
  0x3b   :  { %182 = vmatpush1.bf16.msra.mxu0 %v1790_v3  ;;  %255 = vmatpush1.bf16.msra.mxu1 %v1791_v4  ;;  %v1797_v8 = vld [vmem:[#allocation7 + $0x28] ss:$16 sps:$4 sm:$0xff]   ;;  %v1798_v9 = vld [vmem:[#allocation4] sm:$0xff]   ;;  %v2247_v11 = vld [vmem:[#allocation9 + $0xc] ss:$16 sps:$4 sm:$0xff]   ;;  %v2158_v45 = vmov 0.0|0.0  }
  0x3c   :  { %183 = vmatprep.subr.bf16.mxu0 %v1792_v5  ;;  %256 = vmatprep.subr.bf16.mxu1 %v1794_v6  ;;  %v2245_v10 = vld [vmem:[#allocation9 + $0x4] ss:$16 sps:$4 sm:$0xff]   ;;  %v2249_v12 = vld [vmem:[#allocation9] ss:$16 sps:$4 sm:$0xff]   ;;  %v2251_v13 = vld [vmem:[#allocation9 + $0x8] ss:$16 sps:$4 sm:$0xff]  }
  0x3d   :  { %v2254_v14 = vld [vmem:[#allocation9 + $0x24] ss:$16 sps:$4 sm:$0xff]   ;;  %v2257_v15 = vld [vmem:[#allocation9 + $0x2c] ss:$16 sps:$4 sm:$0xff]   ;;  %v2261_v16 = vld [vmem:[#allocation9 + $0x20] ss:$16 sps:$4 sm:$0xff]  }
  0x3e   :  { %v2265_v17 = vld [vmem:[#allocation9 + $0x28] ss:$16 sps:$4 sm:$0xff]   ;;  %v2269_v18 = vld [vmem:[#allocation9 + $0x44] ss:$16 sps:$4 sm:$0xff]   ;;  %v2273_v20 = vld [vmem:[#allocation9 + $0x4c] ss:$16 sps:$4 sm:$0xff]  }
  0x3f   :  { %184 = vmatpush1.bf16.msra.mxu0 %v1796_v7  ;;  %257 = vmatpush1.bf16.msra.mxu1 %v1797_v8  ;;  %v1811_v19 = vld [vmem:[#allocation4 + $0x8] sm:$0xff]   ;;  %v2275_v21 = vld [vmem:[#allocation9 + $0x40] ss:$16 sps:$4 sm:$0xff]   ;;  %v2283_v23 = vld [vmem:[#allocation9 + $0x64] ss:$16 sps:$4 sm:$0xff]   ;;  %v2393_v47 = vshrl.u32 %v88_v46, 7 }
  0x40   :  { %558 = vmatprep.subr.bf16.mxu0 %v2245_v10  ;;  %599 = vmatprep.subr.bf16.mxu1 %v2247_v11  ;;  %v2279_v22 = vld [vmem:[#allocation9 + $0x48] ss:$16 sps:$4 sm:$0xff]   ;;  %v2285_v24 = vld [vmem:[#allocation9 + $0x6c] ss:$16 sps:$4 sm:$0xff]   ;;  %v2289_v25 = vld [vmem:[#allocation9 + $0x60] ss:$16 sps:$4 sm:$0xff]  }
  0x41   :  { %v2293_v26 = vld [vmem:[#allocation9 + $0x68] ss:$16 sps:$4 sm:$0xff]   ;;  %v2297_v27 = vld [vmem:[#allocation9 + $0x84] ss:$16 sps:$4 sm:$0xff]   ;;  %v2299_v28 = vld [vmem:[#allocation9 + $0x8c] ss:$16 sps:$4 sm:$0xff]  }
  0x42   :  { %1706 = vmatmul.mubr.msk.bf16.vlgmr.msra.gmra.mrb[0].mxu0 %vm168_vm0, %v1798_v9  ;;  %1710 = vmatmul.mubr.msk.bf16.vlgmr.msra.gmra.mrb[0].mxu1 %vm168_vm0, %v1798_v9  ;;  %v1824_v29 = vld [vmem:[#allocation4 + $0x10] sm:$0xff]   ;;  %v2305_v31 = vld [vmem:[#allocation9 + $0x88] ss:$16 sps:$4 sm:$0xff]   ;;  %v2313_v33 = vld [vmem:[#allocation9 + $0xac] ss:$16 sps:$4 sm:$0xff]   ;;  %2933 = vst [vmem:[#allocation18_spill] sm:$0xff] %v2393_v47 }
  0x43   :  { %559 = vmatpush1.bf16.msra.mxu0 %v2249_v12  ;;  %600 = vmatpush1.bf16.msra.mxu1 %v2251_v13  ;;  %v2303_v30 = vld [vmem:[#allocation9 + $0x80] ss:$16 sps:$4 sm:$0xff]   ;;  %v2309_v32 = vld [vmem:[#allocation9 + $0xa4] ss:$16 sps:$4 sm:$0xff]   ;;  %v2319_v35 = vld [vmem:[#allocation9 + $0xa8] ss:$16 sps:$4 sm:$0xff]  }
  0x44   :  { %560 = vmatprep.subr.bf16.mxu0 %v2254_v14  ;;  %601 = vmatprep.subr.bf16.mxu1 %v2257_v15  ;;  %v2317_v34 = vld [vmem:[#allocation9 + $0xa0] ss:$16 sps:$4 sm:$0xff]   ;;  %v2323_v36 = vld [vmem:[#allocation9 + $0xc4] ss:$16 sps:$4 sm:$0xff]   ;;  %v2327_v37 = vld [vmem:[#allocation9 + $0xcc] ss:$16 sps:$4 sm:$0xff]  }
  0x45   :  { %223 = vmatprep.mubr.bf16.mxu0 %v2929_v0  ;;  %296 = vmatprep.mubr.bf16.mxu1 %v2929_v0  ;;  %v1837_v38 = vld [vmem:[#allocation4 + $0x18] sm:$0xff]   ;;  %v2333_v39 = vld [vmem:[#allocation9 + $0xc0] ss:$16 sps:$4 sm:$0xff]   ;;  %v2339_v41 = vld [vmem:[#allocation9 + $0xe4] ss:$16 sps:$4 sm:$0xff]   ;;  %v98_v48 = vsub.s32 2, %v2393_v47 }
  0x46   :  { %v2335_v40 = vld [vmem:[#allocation9 + $0xc8] ss:$16 sps:$4 sm:$0xff]   ;;  %v2341_v42 = vld [vmem:[#allocation9 + $0xec] ss:$16 sps:$4 sm:$0xff]   ;;  %v2347_v43 = vld [vmem:[#allocation9 + $0xe0] ss:$16 sps:$4 sm:$0xff]  }
  0x47   :  { %561 = vmatpush1.bf16.msra.mxu0 %v2261_v16  ;;  %602 = vmatpush1.bf16.msra.mxu1 %v2265_v17  ;;  %v2349_v44 = vld [vmem:[#allocation9 + $0xe8] ss:$16 sps:$4 sm:$0xff]   ;;  %v102_v49 = vsub.s32 3, %v2393_v47  ;;  %v90_v50 = vsub.s32 0, %v2393_v47  ;;  %v86_v51 = vld [vmem:[%s2925_s3] sm:$0xf] }
  0x48   :  { %562 = vmatprep.subr.bf16.mxu0 %v2269_v18  ;;  %603 = vmatprep.subr.bf16.mxu1 %v2273_v20  ;;  %v94_v52 = vsub.s32 1, %v2393_v47  ;;  %v2402_v53 = vrot.slane %v86_v51, %v98_v48  ;;  %s2161_s3 = smov [#allocation11]   ;;  %s2162_s13 = smov [#allocation13]  }
  0x49   :  { %v2408_v56 = vrot.slane %v86_v51, %v102_v49  ;;  %v91_v57 = vrot.slane %v86_v51, %v90_v50  ;;  %s1667_s8 = sshll.u32 %s2161_s3, 4  ;;  %s1677_s14 = sshll.u32 %s2162_s13, 4  ;;  %s1668_s8 = int_to_ptr.vmem [resolvable:$true] %s1667_s8  ;;  %s2853_s14 = int_to_ptr.vmem [resolvable:$true] %s1677_s14 }
  0x4a   :  { %1707 = vmatmul.mubr.msk.bf16.gmra.mrb[4].mxu0 %vm168_vm0, %v1811_v19  ;;  %1711 = vmatmul.mubr.msk.bf16.gmra.mrb[4].mxu1 %vm168_vm0, %v1811_v19  ;;  %v95_v60 = vrot.slane %v86_v51, %v94_v52  ;;  %s2076_s15 = scalar_lea.vmem %s1668_s8, 128  ;;  %p2081_p11 = scmp.lt.s32.totalorder %s1668_s8, %s1668_s8 }
  0x4b   :  { %563 = vmatpush1.bf16.msra.mxu0 %v2275_v21  ;;  %604 = vmatpush1.bf16.msra.mxu1 %v2279_v22  ;;  %p2077_p10 = scmp.ne.s32.totalorder %s1668_s8, %s2076_s15  ;;  %p2082_p12 = scmp.lt.s32.totalorder %s2076_s15, %s2076_s15 }
  0x4c   :  { %564 = vmatprep.subr.bf16.mxu0 %v2283_v23  ;;  %605 = vmatprep.subr.bf16.mxu1 %v2285_v24 }
  0x4d   :  { %233 = vmatprep.mubr.bf16.mxu0 %v2929_v0  ;;  %306 = vmatprep.mubr.bf16.mxu1 %v2929_v0  ;;  %p2083_p13 = por %p2082_p12, %p2081_p11 }
  0x4f   :  { %565 = vmatpush1.bf16.msra.mxu0 %v2289_v25  ;;  %606 = vmatpush1.bf16.msra.mxu1 %v2293_v26  ;;  %p2084_p0 = pnand %p2083_p13, %p2077_p10 }
  0x50   :  { %566 = vmatprep.subr.bf16.mxu0 %v2297_v27  ;;  %607 = vmatprep.subr.bf16.mxu1 %v2299_v28 }
  0x52   :  { %1708 = vmatmul.mubr.msk.bf16.gmra.mrb[8].mxu0 %vm168_vm0, %v1824_v29  ;;  %1712 = vmatmul.mubr.msk.bf16.gmra.mrb[8].mxu1 %vm168_vm0, %v1824_v29 }
  0x53   :  { %567 = vmatpush1.bf16.msra.mxu0 %v2303_v30  ;;  %608 = vmatpush1.bf16.msra.mxu1 %v2305_v31 }
  0x54   :  { %568 = vmatprep.subr.bf16.mxu0 %v2309_v32  ;;  %609 = vmatprep.subr.bf16.mxu1 %v2313_v33 }
  0x55   :  { %243 = vmatprep.mubr.bf16.mxu0 %v2929_v0  ;;  %316 = vmatprep.mubr.bf16.mxu1 %v2929_v0 }
  0x57   :  { %569 = vmatpush1.bf16.msra.mxu0 %v2317_v34  ;;  %610 = vmatpush1.bf16.msra.mxu1 %v2319_v35 }
  0x58   :  { %570 = vmatprep.subr.bf16.mxu0 %v2323_v36  ;;  %611 = vmatprep.subr.bf16.mxu1 %v2327_v37 }
  0x5a   :  { %1709 = vmatmul.mubr.msk.bf16.gmra.mrb[12].mxu0 %vm168_vm0, %v1837_v38  ;;  %1713 = vmatmul.mubr.msk.bf16.gmra.mrb[12].mxu1 %vm168_vm0, %v1837_v38 }
  0x5b   :  { %571 = vmatpush1.bf16.msra.mxu0 %v2333_v39  ;;  %612 = vmatpush1.bf16.msra.mxu1 %v2335_v40 }
  0x5c   :  { %572 = vmatprep.subr.bf16.mxu0 %v2339_v41  ;;  %613 = vmatprep.subr.bf16.mxu1 %v2341_v42 }
  0x5d   :  { %590 = vmatprep.mubr.bf16.mxu0 %v2929_v0  ;;  %631 = vmatprep.mubr.bf16.mxu1 %v2929_v0 }
  0x5f   :  { %573 = vmatpush1.bf16.msra.mxu0 %v2347_v43  ;;  %614 = vmatpush1.bf16.msra.mxu1 %v2349_v44 }
  0x60   :  { %675 = vmatprep.subr.bf16.mxu0 %v2245_v10  ;;  %716 = vmatprep.subr.bf16.mxu1 %v2247_v11 }
  0x62   :  { %591 = vmatmul.mubr.bf16.vlgmr.msra.gmra.mrb[16].mxu0 %v2158_v45  ;;  %632 = vmatmul.mubr.bf16.vlgmr.msra.gmra.mrb[16].mxu1 %v2158_v45 }
  0x63   :  { %676 = vmatpush1.bf16.msra.mxu0 %v2249_v12  ;;  %717 = vmatpush1.bf16.msra.mxu1 %v2251_v13 }
  0x64   :  { %677 = vmatprep.subr.bf16.mxu0 %v2254_v14  ;;  %718 = vmatprep.subr.bf16.mxu1 %v2257_v15 }
  0x65   :  { %707 = vmatprep.mubr.bf16.mxu0 %v2929_v0  ;;  %748 = vmatprep.mubr.bf16.mxu1 %v2929_v0 }
  0x67   :  { %678 = vmatpush1.bf16.msra.mxu0 %v2261_v16  ;;  %719 = vmatpush1.bf16.msra.mxu1 %v2265_v17 }
  0x68   :  { %679 = vmatprep.subr.bf16.mxu0 %v2269_v18  ;;  %720 = vmatprep.subr.bf16.mxu1 %v2273_v20 }
  0x6b   :  { %680 = vmatpush1.bf16.msra.mxu0 %v2275_v21  ;;  %721 = vmatpush1.bf16.msra.mxu1 %v2279_v22 }
  0x6c   :  { %681 = vmatprep.subr.bf16.mxu0 %v2283_v23  ;;  %722 = vmatprep.subr.bf16.mxu1 %v2285_v24 }
  0x6f   :  { %682 = vmatpush1.bf16.msra.mxu0 %v2289_v25  ;;  %723 = vmatpush1.bf16.msra.mxu1 %v2293_v26 }
  0x70   :  { %683 = vmatprep.subr.bf16.mxu0 %v2297_v27  ;;  %724 = vmatprep.subr.bf16.mxu1 %v2299_v28 }
  0x73   :  { %684 = vmatpush1.bf16.msra.mxu0 %v2303_v30  ;;  %725 = vmatpush1.bf16.msra.mxu1 %v2305_v31 }
  0x74   :  { %685 = vmatprep.subr.bf16.mxu0 %v2309_v32  ;;  %726 = vmatprep.subr.bf16.mxu1 %v2313_v33 }
  0x77   :  { %686 = vmatpush1.bf16.msra.mxu0 %v2317_v34  ;;  %727 = vmatpush1.bf16.msra.mxu1 %v2319_v35 }
  0x78   :  { %687 = vmatprep.subr.bf16.mxu0 %v2323_v36  ;;  %728 = vmatprep.subr.bf16.mxu1 %v2327_v37 }
  0x7b   :  { %688 = vmatpush1.bf16.msra.mxu0 %v2333_v39  ;;  %729 = vmatpush1.bf16.msra.mxu1 %v2335_v40 }
  0x7c   :  { %689 = vmatprep.subr.bf16.mxu0 %v2339_v41  ;;  %730 = vmatprep.subr.bf16.mxu1 %v2341_v42 }
  0x7f   :  { %690 = vmatpush1.bf16.msra.mxu0 %v2347_v43  ;;  %731 = vmatpush1.bf16.msra.mxu1 %v2349_v44 }
  0x80   :  { %793 = vmatprep.subr.bf16.mxu0 %v2245_v10  ;;  %834 = vmatprep.subr.bf16.mxu1 %v2247_v11 }
 0x115   :  { %v2404_v54 = vpop.f32.mrb[0].mxu0  ;;  %v2406_v55 = vpop.f32.mrb[0].mxu1 }
 0x116   :  { %v217_v58 = vpop.f32.mrb[1].mxu0  ;;  %v290_v59 = vpop.f32.mrb[1].mxu1 }
 0x117   :  { %v219_v61 = vpop.f32.mrb[2].mxu0  ;;  %v292_v62 = vpop.f32.mrb[2].mxu1 }
 0x118   :  { %v2410_v63 = vadd.f32 %v219_v61, %v91_v57  ;;  %v221_v1 = vpop.f32.mrb[3].mxu0  ;;  %v2413_v2 = vadd.f32 %v292_v62, %v2402_v53  ;;  %v294_v3 = vpop.f32.mrb[3].mxu1 }
 0x119   :  { %v2415_v4 = vadd.f32 %v221_v1, %v95_v60  ;;  %v2418_v5 = vadd.f32 %v294_v3, %v2408_v56 }
 0x11d   :  { %v225_v6 = vpop.f32.mrb[4].mxu0  ;;  %v298_v7 = vpop.f32.mrb[4].mxu1 }
 0x11e   :  { %v2420_v8 = vadd.f32 %v225_v6, %v91_v57  ;;  %v227_v9 = vpop.f32.mrb[5].mxu0  ;;  %v2423_v19 = vadd.f32 %v298_v7, %v2402_v53  ;;  %v300_v29 = vpop.f32.mrb[5].mxu1 }
 0x11f   :  { %v2425_v38 = vadd.f32 %v227_v9, %v95_v60  ;;  %v229_v45 = vpop.f32.mrb[6].mxu0  ;;  %v2428_v46 = vadd.f32 %v300_v29, %v2408_v56  ;;  %v302_v48 = vpop.f32.mrb[6].mxu1 }
 0x120   :  { %v2430_v49 = vadd.f32 %v229_v45, %v91_v57  ;;  %v231_v50 = vpop.f32.mrb[7].mxu0  ;;  %v2433_v51 = vadd.f32 %v302_v48, %v2402_v53  ;;  %v304_v52 = vpop.f32.mrb[7].mxu1 }
 0x121   :  { %2934 = vst [vmem:[#allocation19_spill] sm:$0xff] %v2428_v46  ;;  %v2435_v61 = vadd.f32 %v231_v50, %v95_v60  ;;  %v2438_v62 = vadd.f32 %v304_v52, %v2408_v56 }
 0x122   :  { %2935 = vst [vmem:[#allocation20_spill] sm:$0xff] %v2430_v49  ;;  %2936 = vst [vmem:[#allocation21_spill] sm:$0xff] %v2433_v51 }
 0x123   :  { %2937 = vst [vmem:[#allocation22_spill] sm:$0xff] %v2435_v61  ;;  %2938 = vst [vmem:[#allocation23_spill] sm:$0xff] %v2438_v62 }
 0x125   :  { %v235_v1 = vpop.f32.mrb[8].mxu0  ;;  %v308_v3 = vpop.f32.mrb[8].mxu1 }
 0x126   :  { %v2440_v6 = vadd.f32 %v235_v1, %v91_v57  ;;  %v237_v7 = vpop.f32.mrb[9].mxu0  ;;  %v2443_v9 = vadd.f32 %v308_v3, %v2402_v53  ;;  %v310_v29 = vpop.f32.mrb[9].mxu1 }
 0x127   :  { %v2445_v45 = vadd.f32 %v237_v7, %v95_v60  ;;  %v239_v0 = vpop.f32.mrb[10].mxu0  ;;  %v2448_v48 = vadd.f32 %v310_v29, %v2408_v56  ;;  %v312_v50 = vpop.f32.mrb[10].mxu1 }
 0x128   :  { %2939 = vst [vmem:[#allocation24_spill] sm:$0xff] %v2440_v6  ;;  %2940 = vst [vmem:[#allocation25_spill] sm:$0xff] %v2443_v9  ;;  %v2450_v47 = vadd.f32 %v239_v0, %v91_v57  ;;  %v241_v52 = vpop.f32.mrb[11].mxu0  ;;  %v2453_v62 = vadd.f32 %v312_v50, %v2402_v53  ;;  %v314_v1 = vpop.f32.mrb[11].mxu1 }
 0x129   :  { %2941 = vst [vmem:[#allocation26_spill] sm:$0xff] %v2445_v45  ;;  %2942 = vst [vmem:[#allocation27_spill] sm:$0xff] %v2448_v48  ;;  %v2455_v6 = vadd.f32 %v241_v52, %v95_v60  ;;  %v2458_v3 = vadd.f32 %v314_v1, %v2408_v56 }
 0x12a   :  { %2943 = vst [vmem:[#allocation28_spill] sm:$0xff] %v2450_v47  ;;  %2944 = vst [vmem:[#allocation29_spill] sm:$0xff] %v2453_v62 }
 0x12b   :  { %2945 = vst [vmem:[#allocation30_spill] sm:$0xff] %v2455_v6  ;;  %2946 = vst [vmem:[#allocation31_spill] sm:$0xff] %v2458_v3 }
 0x12d   :  { %v245_v9 = vpop.f32.mrb[12].mxu0  ;;  %v318_v7 = vpop.f32.mrb[12].mxu1 }
 0x12e   :  { %v2460_v45 = vadd.f32 %v245_v9, %v91_v57  ;;  %v247_v61 = vpop.f32.mrb[13].mxu0  ;;  %v2463_v29 = vadd.f32 %v318_v7, %v2402_v53  ;;  %v320_v0 = vpop.f32.mrb[13].mxu1 }
 0x12f   :  { %v2465_v47 = vadd.f32 %v247_v61, %v95_v60  ;;  %v249_v48 = vpop.f32.mrb[14].mxu0  ;;  %v2468_v50 = vadd.f32 %v320_v0, %v2408_v56  ;;  %v322_v52 = vpop.f32.mrb[14].mxu1  ;;  %v216_v61 = vadd.f32 %v2404_v54, %v91_v57  ;;  %v218_v0 = vadd.f32 %v217_v58, %v95_v60 }
 0x130   :  { %2947 = vst [vmem:[#allocation32_spill] sm:$0xff] %v2460_v45  ;;  %2948 = vst [vmem:[#allocation33_spill] sm:$0xff] %v2463_v29  ;;  %v2470_v6 = vadd.f32 %v249_v48, %v91_v57  ;;  %v251_v1 = vpop.f32.mrb[15].mxu0  ;;  %v2473_v3 = vadd.f32 %v322_v52, %v2402_v53  ;;  %v324_v9 = vpop.f32.mrb[15].mxu1 }
 0x131   :  { %2949 = vst [vmem:[#allocation34_spill] sm:$0xff] %v2465_v47  ;;  %2950 = vst [vmem:[#allocation35_spill] sm:$0xff] %v2468_v50  ;;  %v2475_v45 = vadd.f32 %v251_v1, %v95_v60  ;;  %v2478_v7 = vadd.f32 %v324_v9, %v2408_v56  ;;  %v289_v47 = vadd.f32 %v2406_v55, %v2402_v53 }
 0x132   :  { %2951 = vst [vmem:[#allocation36_spill] sm:$0xff] %v2470_v6  ;;  %2952 = vst [vmem:[#allocation37_spill] sm:$0xff] %v2473_v3  ;;  %v291_v50 = vadd.f32 %v290_v59, %v2408_v56 }
 0x133   :  { %2953 = vst [vmem:[#allocation38_spill] sm:$0xff] %v2475_v45  ;;  %2954 = vst [vmem:[#allocation39_spill] sm:$0xff] %v2478_v7 }
 0x135   :  { %v592_v48 = vpop.f32.mrb[16].mxu0  ;;  %v633_v6 = vpop.f32.mrb[16].mxu1 }
 0x136   :  { %v640_v29 = vadd.f32 %v592_v48, %v216_v61  ;;  %v642_v62 = vadd.f32 %v633_v6, %v289_v47  ;;  %v594_v52 = vpop.f32.mrb[17].mxu0  ;;  %v635_v3 = vpop.f32.mrb[17].mxu1 }
 0x137   :  { %v641_v51 = vadd.f32 %v594_v52, %v218_v0  ;;  %v643_v1 = vadd.f32 %v635_v3, %v291_v50  ;;  %v596_v45 = vpop.f32.mrb[18].mxu0  ;;  %v637_v49 = vpop.f32.mrb[18].mxu1 }
 0x138   :  { %v1746_v9 = vmul.f32 -1.442695, %v640_v29  ;;  %v597_v7 = vpop.f32.mrb[19].mxu0  ;;  %v638_v46 = vpop.f32.mrb[19].mxu1 }
 0x139   :  { %v1747_v54 = vmul.f32 -1.442695, %v641_v51  ;;  %v1748_v53 = vmul.f32 -1.442695, %v643_v1  ;;  %v2955_v7 = vmov 0  }
 0x13a   :  { %1850 = vpow2.f32 %v1746_v9 }
 0x13b   :  { %1852 = vpow2.f32 %v1747_v54 }
 0x13c   :  { %1854 = vpow2.f32 %v1748_v53 }
 0x13d   :  { %1856 = vtanh.f32 %v642_v62 }
 0x144   :  { %v1851_v55 = vpop.eup %1850 }
 0x145   :  { %v1853_v57 = vpop.eup %1852  ;;  %v647_v56 = vadd.f32 1.0, %v1851_v55 }
 0x146   :  { %v653_v58 = vadd.f32 1.0, %v1853_v57  ;;  %v1855_v47 = vpop.eup %1854 }
 0x147   :  { %1858 = vrcp.f32 %v647_v56  ;;  %v1857_v59 = vpop.eup %1856  ;;  %v660_v45 = vadd.f32 1.0, %v1855_v47 }
 0x148   :  { %1860 = vrcp.f32 %v653_v58 }
 0x149   :  { %1862 = vrcp.f32 %v660_v45 }
 0x151   :  { %v1859_v60 = vpop.eup %1858 }
 0x152   :  { %v1861_v6 = vpop.eup %1860  ;;  %v664_v49 = vmul.f32 %v1859_v60, %v1857_v59 }
 0x153   :  { %v663_v3 = vmul.f32 0.0, %v1861_v6  ;;  %v1863_v51 = vpop.eup %1862 }
 0x155   :  { %v2484_v46 = vadd.f32 %v664_v49, %v663_v3 }
 0x157   :  { %1864 = vtanh.f32 %v2484_v46 }
 0x161   :  { %v1865_v29 = vpop.eup %1864 }
 0x162   :  { %v2487_v50 = vmul.f32 %v1865_v29, %v1863_v51 }
 0x164   :  { %v674_v62 = vpack.c.bf16 %v2487_v50, %v2487_v50 }
 0x166   :  { %708 = vmatmul.mubr.bf16.vlgmr.msra.gmra.mrb[20].mxu0 %v674_v62  ;;  %749 = vmatmul.mubr.bf16.vlgmr.msra.gmra.mrb[20].mxu1 %v674_v62 }
 0x167   :  { %794 = vmatpush1.bf16.msra.mxu0 %v2249_v12  ;;  %835 = vmatpush1.bf16.msra.mxu1 %v2251_v13 }
 0x168   :  { %795 = vmatprep.subr.bf16.mxu0 %v2254_v14  ;;  %836 = vmatprep.subr.bf16.mxu1 %v2257_v15 }
 0x169   :  { %825 = vmatprep.mubr.bf16.mxu0 %v2955_v7  ;;  %866 = vmatprep.mubr.bf16.mxu1 %v2955_v7 }
 0x16b   :  { %796 = vmatpush1.bf16.msra.mxu0 %v2261_v16  ;;  %837 = vmatpush1.bf16.msra.mxu1 %v2265_v17 }
 0x16c   :  { %797 = vmatprep.subr.bf16.mxu0 %v2269_v18  ;;  %838 = vmatprep.subr.bf16.mxu1 %v2273_v20 }
 0x16f   :  { %798 = vmatpush1.bf16.msra.mxu0 %v2275_v21  ;;  %839 = vmatpush1.bf16.msra.mxu1 %v2279_v22 }
 0x170   :  { %799 = vmatprep.subr.bf16.mxu0 %v2283_v23  ;;  %840 = vmatprep.subr.bf16.mxu1 %v2285_v24 }
 0x173   :  { %800 = vmatpush1.bf16.msra.mxu0 %v2289_v25  ;;  %841 = vmatpush1.bf16.msra.mxu1 %v2293_v26 }
 0x174   :  { %801 = vmatprep.subr.bf16.mxu0 %v2297_v27  ;;  %842 = vmatprep.subr.bf16.mxu1 %v2299_v28 }
 0x177   :  { %802 = vmatpush1.bf16.msra.mxu0 %v2303_v30  ;;  %843 = vmatpush1.bf16.msra.mxu1 %v2305_v31 }
 0x178   :  { %803 = vmatprep.subr.bf16.mxu0 %v2309_v32  ;;  %844 = vmatprep.subr.bf16.mxu1 %v2313_v33 }
 0x17b   :  { %804 = vmatpush1.bf16.msra.mxu0 %v2317_v34  ;;  %845 = vmatpush1.bf16.msra.mxu1 %v2319_v35 }
 0x17c   :  { %805 = vmatprep.subr.bf16.mxu0 %v2323_v36  ;;  %846 = vmatprep.subr.bf16.mxu1 %v2327_v37 }
 0x17f   :  { %806 = vmatpush1.bf16.msra.mxu0 %v2333_v39  ;;  %847 = vmatpush1.bf16.msra.mxu1 %v2335_v40 }
 0x180   :  { %807 = vmatprep.subr.bf16.mxu0 %v2339_v41  ;;  %848 = vmatprep.subr.bf16.mxu1 %v2341_v42 }
 0x183   :  { %808 = vmatpush1.bf16.msra.mxu0 %v2347_v43  ;;  %849 = vmatpush1.bf16.msra.mxu1 %v2349_v44 }
 0x184   :  { %911 = vmatprep.subr.bf16.mxu0 %v2245_v10  ;;  %952 = vmatprep.subr.bf16.mxu1 %v2247_v11 }
 0x239   :  { %v709_v61 = vpop.f32.mrb[20].mxu0  ;;  %v750_v0 = vpop.f32.mrb[20].mxu1 }
 0x23a   :  { %v757_v48 = vadd.f32 %v709_v61, %v2410_v63  ;;  %v759_v52 = vadd.f32 %v750_v0, %v2413_v2  ;;  %v711_v1 = vpop.f32.mrb[21].mxu0  ;;  %v752_v9 = vpop.f32.mrb[21].mxu1 }
 0x23b   :  { %v758_v54 = vadd.f32 %v711_v1, %v2415_v4  ;;  %v760_v53 = vadd.f32 %v752_v9, %v2418_v5  ;;  %v713_v55 = vpop.f32.mrb[22].mxu0  ;;  %v754_v57 = vpop.f32.mrb[22].mxu1 }
 0x23c   :  { %v1749_v56 = vmul.f32 -1.442695, %v757_v48  ;;  %v714_v58 = vpop.f32.mrb[23].mxu0  ;;  %v755_v47 = vpop.f32.mrb[23].mxu1 }
 0x23d   :  { %v1750_v59 = vmul.f32 -1.442695, %v758_v54  ;;  %v1751_v60 = vmul.f32 -1.442695, %v760_v53  ;;  %v2956_v58 = vld [vmem:[#allocation19_spill] sm:$0xff] }
 0x23e   :  { %1866 = vpow2.f32 %v1749_v56 }
 0x23f   :  { %1868 = vpow2.f32 %v1750_v59 }
 0x240   :  { %1870 = vpow2.f32 %v1751_v60 }
 0x241   :  { %1872 = vtanh.f32 %v759_v52 }
 0x248   :  { %v1867_v6 = vpop.eup %1866 }
 0x249   :  { %v1869_v49 = vpop.eup %1868  ;;  %v764_v63 = vadd.f32 1.0, %v1867_v6 }
 0x24a   :  { %v770_v2 = vadd.f32 1.0, %v1869_v49  ;;  %v1871_v4 = vpop.eup %1870 }
 0x24b   :  { %1874 = vrcp.f32 %v764_v63  ;;  %v1873_v45 = vpop.eup %1872  ;;  %v777_v29 = vadd.f32 1.0, %v1871_v4 }
 0x24c   :  { %1876 = vrcp.f32 %v770_v2 }
 0x24d   :  { %1878 = vrcp.f32 %v777_v29 }
 0x255   :  { %v1875_v5 = vpop.eup %1874 }
 0x256   :  { %v1877_v3 = vpop.eup %1876  ;;  %v781_v51 = vmul.f32 %v1875_v5, %v1873_v45 }
 0x257   :  { %v780_v62 = vmul.f32 %v1877_v3, %v2484_v46  ;;  %v1879_v0 = vpop.eup %1878 }
 0x259   :  { %v2530_v61 = vadd.f32 %v781_v51, %v780_v62 }
 0x25b   :  { %1880 = vtanh.f32 %v2530_v61 }
 0x265   :  { %v1881_v48 = vpop.eup %1880 }
 0x266   :  { %v2533_v1 = vmul.f32 %v1881_v48, %v1879_v0 }
 0x268   :  { %v792_v52 = vpack.c.bf16 %v2533_v1, %v2533_v1 }
 0x26a   :  { %826 = vmatmul.mubr.bf16.vlgmr.msra.gmra.mrb[24].mxu0 %v792_v52  ;;  %867 = vmatmul.mubr.bf16.vlgmr.msra.gmra.mrb[24].mxu1 %v792_v52 }
 0x26b   :  { %912 = vmatpush1.bf16.msra.mxu0 %v2249_v12  ;;  %953 = vmatpush1.bf16.msra.mxu1 %v2251_v13 }
 0x26c   :  { %913 = vmatprep.subr.bf16.mxu0 %v2254_v14  ;;  %954 = vmatprep.subr.bf16.mxu1 %v2257_v15 }
 0x26d   :  { %943 = vmatprep.mubr.bf16.mxu0 %v2955_v7  ;;  %984 = vmatprep.mubr.bf16.mxu1 %v2955_v7 }
 0x26f   :  { %914 = vmatpush1.bf16.msra.mxu0 %v2261_v16  ;;  %955 = vmatpush1.bf16.msra.mxu1 %v2265_v17 }
 0x270   :  { %915 = vmatprep.subr.bf16.mxu0 %v2269_v18  ;;  %956 = vmatprep.subr.bf16.mxu1 %v2273_v20 }
 0x273   :  { %916 = vmatpush1.bf16.msra.mxu0 %v2275_v21  ;;  %957 = vmatpush1.bf16.msra.mxu1 %v2279_v22 }
 0x274   :  { %917 = vmatprep.subr.bf16.mxu0 %v2283_v23  ;;  %958 = vmatprep.subr.bf16.mxu1 %v2285_v24 }
 0x277   :  { %918 = vmatpush1.bf16.msra.mxu0 %v2289_v25  ;;  %959 = vmatpush1.bf16.msra.mxu1 %v2293_v26 }
 0x278   :  { %919 = vmatprep.subr.bf16.mxu0 %v2297_v27  ;;  %960 = vmatprep.subr.bf16.mxu1 %v2299_v28 }
 0x27b   :  { %920 = vmatpush1.bf16.msra.mxu0 %v2303_v30  ;;  %961 = vmatpush1.bf16.msra.mxu1 %v2305_v31 }
 0x27c   :  { %921 = vmatprep.subr.bf16.mxu0 %v2309_v32  ;;  %962 = vmatprep.subr.bf16.mxu1 %v2313_v33 }
 0x27f   :  { %922 = vmatpush1.bf16.msra.mxu0 %v2317_v34  ;;  %963 = vmatpush1.bf16.msra.mxu1 %v2319_v35 }
 0x280   :  { %923 = vmatprep.subr.bf16.mxu0 %v2323_v36  ;;  %964 = vmatprep.subr.bf16.mxu1 %v2327_v37 }
 0x283   :  { %924 = vmatpush1.bf16.msra.mxu0 %v2333_v39  ;;  %965 = vmatpush1.bf16.msra.mxu1 %v2335_v40 }
 0x284   :  { %925 = vmatprep.subr.bf16.mxu0 %v2339_v41  ;;  %966 = vmatprep.subr.bf16.mxu1 %v2341_v42 }
 0x287   :  { %926 = vmatpush1.bf16.msra.mxu0 %v2347_v43  ;;  %967 = vmatpush1.bf16.msra.mxu1 %v2349_v44 }
 0x288   :  { %1029 = vmatprep.subr.bf16.mxu0 %v2245_v10  ;;  %1070 = vmatprep.subr.bf16.mxu1 %v2247_v11 }
 0x33d   :  { %v827_v46 = vpop.f32.mrb[24].mxu0  ;;  %v868_v9 = vpop.f32.mrb[24].mxu1 }
 0x33e   :  { %v875_v54 = vadd.f32 %v827_v46, %v2420_v8  ;;  %v877_v53 = vadd.f32 %v868_v9, %v2423_v19  ;;  %v829_v55 = vpop.f32.mrb[25].mxu0  ;;  %v870_v57 = vpop.f32.mrb[25].mxu1 }
 0x33f   :  { %v876_v56 = vadd.f32 %v829_v55, %v2425_v38  ;;  %v878_v47 = vadd.f32 %v870_v57, %v2956_v58  ;;  %v831_v59 = vpop.f32.mrb[26].mxu0  ;;  %v872_v60 = vpop.f32.mrb[26].mxu1  ;;  %v2957_v57 = vld [vmem:[#allocation20_spill] sm:$0xff]  ;;  %v2958_v58 = vld [vmem:[#allocation21_spill] sm:$0xff] }
 0x340   :  { %v1752_v6 = vmul.f32 -1.442695, %v875_v54  ;;  %v832_v49 = vpop.f32.mrb[27].mxu0  ;;  %v873_v63 = vpop.f32.mrb[27].mxu1 }
 0x341   :  { %v1753_v2 = vmul.f32 -1.442695, %v876_v56  ;;  %v1754_v4 = vmul.f32 -1.442695, %v878_v47  ;;  %v2960_v63 = vld [vmem:[#allocation23_spill] sm:$0xff] }
 0x342   :  { %1882 = vpow2.f32 %v1752_v6  ;;  %v2959_v6 = vld [vmem:[#allocation22_spill] sm:$0xff] }
 0x343   :  { %1884 = vpow2.f32 %v1753_v2 }
 0x344   :  { %1886 = vpow2.f32 %v1754_v4 }
 0x345   :  { %1888 = vtanh.f32 %v877_v53 }
 0x34c   :  { %v1883_v45 = vpop.eup %1882 }
 0x34d   :  { %v1885_v5 = vpop.eup %1884  ;;  %v882_v8 = vadd.f32 1.0, %v1883_v45 }
 0x34e   :  { %v888_v19 = vadd.f32 1.0, %v1885_v5  ;;  %v1887_v38 = vpop.eup %1886 }
 0x34f   :  { %1890 = vrcp.f32 %v882_v8  ;;  %v1889_v3 = vpop.eup %1888  ;;  %v895_v0 = vadd.f32 1.0, %v1887_v38 }
 0x350   :  { %1892 = vrcp.f32 %v888_v19 }
 0x351   :  { %1894 = vrcp.f32 %v895_v0 }
 0x359   :  { %v1891_v51 = vpop.eup %1890 }
 0x35a   :  { %v1893_v29 = vpop.eup %1892  ;;  %v899_v62 = vmul.f32 %v1891_v51, %v1889_v3 }
 0x35b   :  { %v898_v48 = vmul.f32 %v1893_v29, %v2530_v61  ;;  %v1895_v46 = vpop.eup %1894 }
 0x35d   :  { %v2576_v52 = vadd.f32 %v899_v62, %v898_v48 }
 0x35f   :  { %1896 = vtanh.f32 %v2576_v52 }
 0x369   :  { %v1897_v9 = vpop.eup %1896 }
 0x36a   :  { %v2579_v54 = vmul.f32 %v1897_v9, %v1895_v46 }
 0x36c   :  { %v910_v53 = vpack.c.bf16 %v2579_v54, %v2579_v54 }
 0x36e   :  { %944 = vmatmul.mubr.bf16.vlgmr.msra.gmra.mrb[28].mxu0 %v910_v53  ;;  %985 = vmatmul.mubr.bf16.vlgmr.msra.gmra.mrb[28].mxu1 %v910_v53 }
 0x36f   :  { %1030 = vmatpush1.bf16.msra.mxu0 %v2249_v12  ;;  %1071 = vmatpush1.bf16.msra.mxu1 %v2251_v13 }
 0x370   :  { %1031 = vmatprep.subr.bf16.mxu0 %v2254_v14  ;;  %1072 = vmatprep.subr.bf16.mxu1 %v2257_v15 }
 0x371   :  { %1061 = vmatprep.mubr.bf16.mxu0 %v2955_v7  ;;  %1102 = vmatprep.mubr.bf16.mxu1 %v2955_v7 }
 0x373   :  { %1032 = vmatpush1.bf16.msra.mxu0 %v2261_v16  ;;  %1073 = vmatpush1.bf16.msra.mxu1 %v2265_v17 }
 0x374   :  { %1033 = vmatprep.subr.bf16.mxu0 %v2269_v18  ;;  %1074 = vmatprep.subr.bf16.mxu1 %v2273_v20 }
 0x377   :  { %1034 = vmatpush1.bf16.msra.mxu0 %v2275_v21  ;;  %1075 = vmatpush1.bf16.msra.mxu1 %v2279_v22 }
 0x378   :  { %1035 = vmatprep.subr.bf16.mxu0 %v2283_v23  ;;  %1076 = vmatprep.subr.bf16.mxu1 %v2285_v24 }
 0x37b   :  { %1036 = vmatpush1.bf16.msra.mxu0 %v2289_v25  ;;  %1077 = vmatpush1.bf16.msra.mxu1 %v2293_v26 }
 0x37c   :  { %1037 = vmatprep.subr.bf16.mxu0 %v2297_v27  ;;  %1078 = vmatprep.subr.bf16.mxu1 %v2299_v28 }
 0x37f   :  { %1038 = vmatpush1.bf16.msra.mxu0 %v2303_v30  ;;  %1079 = vmatpush1.bf16.msra.mxu1 %v2305_v31 }
 0x380   :  { %1039 = vmatprep.subr.bf16.mxu0 %v2309_v32  ;;  %1080 = vmatprep.subr.bf16.mxu1 %v2313_v33 }
 0x383   :  { %1040 = vmatpush1.bf16.msra.mxu0 %v2317_v34  ;;  %1081 = vmatpush1.bf16.msra.mxu1 %v2319_v35 }
 0x384   :  { %1041 = vmatprep.subr.bf16.mxu0 %v2323_v36  ;;  %1082 = vmatprep.subr.bf16.mxu1 %v2327_v37 }
 0x387   :  { %1042 = vmatpush1.bf16.msra.mxu0 %v2333_v39  ;;  %1083 = vmatpush1.bf16.msra.mxu1 %v2335_v40 }
 0x388   :  { %1043 = vmatprep.subr.bf16.mxu0 %v2339_v41  ;;  %1084 = vmatprep.subr.bf16.mxu1 %v2341_v42 }
 0x38b   :  { %1044 = vmatpush1.bf16.msra.mxu0 %v2347_v43  ;;  %1085 = vmatpush1.bf16.msra.mxu1 %v2349_v44 }
 0x38c   :  { %1147 = vmatprep.subr.bf16.mxu0 %v2245_v10  ;;  %1188 = vmatprep.subr.bf16.mxu1 %v2247_v11 }
 0x441   :  { %v945_v61 = vpop.f32.mrb[28].mxu0  ;;  %v986_v55 = vpop.f32.mrb[28].mxu1 }
 0x442   :  { %v993_v56 = vadd.f32 %v945_v61, %v2957_v57  ;;  %v995_v47 = vadd.f32 %v986_v55, %v2958_v58  ;;  %v947_v59 = vpop.f32.mrb[29].mxu0  ;;  %v988_v60 = vpop.f32.mrb[29].mxu1  ;;  %v2159_v57 = vmov 1983009808  }
 0x443   :  { %v994_v49 = vadd.f32 %v947_v59, %v2959_v6  ;;  %v996_v2 = vadd.f32 %v988_v60, %v2960_v63  ;;  %v949_v4 = vpop.f32.mrb[30].mxu0  ;;  %v990_v45 = vpop.f32.mrb[30].mxu1  ;;  %v1505_v60 = vcombine.low %v2487_v50, %v2579_v54  ;;  %v2961_v6 = vld [vmem:[#allocation18_spill] sm:$0xff]  ;;  %v1506_v63 = vcombine.high %v2487_v50, %v2579_v54 }
 0x444   :  { %v1755_v5 = vmul.f32 -1.442695, %v993_v56  ;;  %v950_v8 = vpop.f32.mrb[31].mxu0  ;;  %v991_v19 = vpop.f32.mrb[31].mxu1  ;;  %v1508_v56 = vunpack.c.l.s4 %v2159_v57  ;;  %v2713_v57 = vld [vmem:[#allocation9 + $0x2c] ss:$16 sps:$4 sm:$0xff]  }
 0x445   :  { %v1756_v10 = vmul.f32 -1.442695, %v994_v49  ;;  %v1757_v11 = vmul.f32 -1.442695, %v996_v2 }
 0x446   :  { %1898 = vpow2.f32 %v1755_v5  ;;  %v1509_v58 = vunpack.c.0.s8 %v1508_v56  ;;  %v2718_v56 = vld [vmem:[#allocation9 + $0x20] ss:$16 sps:$4 sm:$0xff]  }
 0x447   :  { %1900 = vpow2.f32 %v1756_v10 }
 0x448   :  { %1902 = vpow2.f32 %v1757_v11  ;;  %v2628_v49 = vsub.s32 %v1509_v58, %v2961_v6  ;;  %v2721_v58 = vld [vmem:[#allocation9 + $0x28] ss:$16 sps:$4 sm:$0xff]  }
 0x449   :  { %1904 = vtanh.f32 %v995_v47 }
 0x44a   :  { %v2635_v5 = vrot.slane %v1505_v60, %v2628_v49  ;;  %v2638_v8 = vrot.slane %v1506_v63, %v2628_v49  ;;  %v2730_v60 = vld [vmem:[#allocation9 + $0x40] ss:$16 sps:$4 sm:$0xff]   ;;  %v2733_v63 = vld [vmem:[#allocation9 + $0x48] ss:$16 sps:$4 sm:$0xff]  }
 0x450   :  { %v1899_v38 = vpop.eup %1898 }
 0x451   :  { %v1901_v3 = vpop.eup %1900  ;;  %v1000_v51 = vadd.f32 1.0, %v1899_v38 }
 0x452   :  { %v1006_v29 = vadd.f32 1.0, %v1901_v3  ;;  %v1903_v62 = vpop.eup %1902 }
 0x453   :  { %1906 = vrcp.f32 %v1000_v51  ;;  %v1905_v0 = vpop.eup %1904  ;;  %v1013_v53 = vadd.f32 1.0, %v1903_v62 }
 0x454   :  { %1908 = vrcp.f32 %v1006_v29 }
 0x455   :  { %1910 = vrcp.f32 %v1013_v53  ;;  %v2704_v53 = vld [vmem:[#allocation9] ss:$16 sps:$4 sm:$0xff]  }
 0x45d   :  { %v1907_v48 = vpop.eup %1906 }
 0x45e   :  { %v1909_v46 = vpop.eup %1908  ;;  %v1017_v9 = vmul.f32 %v1907_v48, %v1905_v0 }
 0x45f   :  { %v1016_v61 = vmul.f32 %v1909_v46, %v2576_v52  ;;  %v1911_v47 = vpop.eup %1910 }
 0x461   :  { %v2622_v55 = vadd.f32 %v1017_v9, %v1016_v61  ;;  %v2707_v61 = vld [vmem:[#allocation9 + $0x8] ss:$16 sps:$4 sm:$0xff]  }
 0x463   :  { %1912 = vtanh.f32 %v2622_v55 }
 0x46d   :  { %v1913_v59 = vpop.eup %1912 }
 0x46e   :  { %v1020_v52 = vmul.f32 %v1913_v59, %v1911_v47  ;;  %v2724_v47 = vld [vmem:[#allocation9 + $0x44] ss:$16 sps:$4 sm:$0xff]   ;;  %v2727_v59 = vld [vmem:[#allocation9 + $0x4c] ss:$16 sps:$4 sm:$0xff]  }
 0x470   :  { %v1028_v2 = vpack.c.bf16 %v1020_v52, %v1020_v52  ;;  %v1521_v4 = vcombine.low %v2533_v1, %v1020_v52  ;;  %v1522_v45 = vcombine.high %v2533_v1, %v1020_v52  ;;  %v2736_v52 = vld [vmem:[#allocation9 + $0x64] ss:$16 sps:$4 sm:$0xff]  }
 0x472   :  { %1062 = vmatmul.mubr.bf16.vlgmr.msra.gmra.mrb[32].mxu0 %v1028_v2  ;;  %v2641_v19 = vrot.slane %v1521_v4, %v2628_v49  ;;  %v2644_v10 = vrot.slane %v1522_v45, %v2628_v49  ;;  %1103 = vmatmul.mubr.bf16.vlgmr.msra.gmra.mrb[32].mxu1 %v1028_v2  ;;  %v2739_v2 = vld [vmem:[#allocation9 + $0x6c] ss:$16 sps:$4 sm:$0xff]   ;;  %v2742_v4 = vld [vmem:[#allocation9 + $0x60] ss:$16 sps:$4 sm:$0xff]   ;;  %v2745_v45 = vld [vmem:[#allocation9 + $0x68] ss:$16 sps:$4 sm:$0xff]  }
 0x473   :  { %1148 = vmatpush1.bf16.msra.mxu0 %v2249_v12  ;;  %1189 = vmatpush1.bf16.msra.mxu1 %v2251_v13  ;;  %v2686_v12 = vld [vmem:[#allocation9 + $0x4] ss:$16 sps:$4 sm:$0xff]   ;;  %v2689_v13 = vld [vmem:[#allocation9 + $0xc] ss:$16 sps:$4 sm:$0xff]  }
 0x474   :  { %v1569_v50 = vcombine.low %v2635_v5, %v2641_v19  ;;  %v1570_v1 = vcombine.high %v2635_v5, %v2641_v19  ;;  %v1585_v54 = vcombine.low %v2638_v8, %v2644_v10  ;;  %v1586_v11 = vcombine.high %v2638_v8, %v2644_v10  ;;  %1149 = vmatprep.subr.bf16.mxu0 %v2254_v14 }
 0x475   :  { %1190 = vmatprep.subr.bf16.mxu1 %v2257_v15  ;;  %1179 = vmatprep.mubr.bf16.mxu0 %v2955_v7 }
 0x476   :  { %1220 = vmatprep.mubr.bf16.mxu1 %v2955_v7 }
 0x477   :  { %1150 = vmatpush1.bf16.msra.mxu0 %v2261_v16  ;;  %1191 = vmatpush1.bf16.msra.mxu1 %v2265_v17  ;;  %v2962_v16 = vld [vmem:[#allocation24_spill] sm:$0xff] }
 0x478   :  { %1151 = vmatprep.subr.bf16.mxu0 %v2269_v18  ;;  %1192 = vmatprep.subr.bf16.mxu1 %v2273_v20  ;;  %v2963_v18 = vld [vmem:[#allocation25_spill] sm:$0xff] }
 0x47b   :  { %1152 = vmatpush1.bf16.msra.mxu0 %v2275_v21  ;;  %1193 = vmatpush1.bf16.msra.mxu1 %v2279_v22 }
 0x47c   :  { %1153 = vmatprep.subr.bf16.mxu0 %v2283_v23  ;;  %1194 = vmatprep.subr.bf16.mxu1 %v2285_v24  ;;  %v2964_v23 = vld [vmem:[#allocation26_spill] sm:$0xff] }
 0x47f   :  { %1154 = vmatpush1.bf16.msra.mxu0 %v2289_v25  ;;  %1195 = vmatpush1.bf16.msra.mxu1 %v2293_v26  ;;  %v2965_v25 = vld [vmem:[#allocation27_spill] sm:$0xff] }
 0x480   :  { %1155 = vmatprep.subr.bf16.mxu0 %v2297_v27  ;;  %1196 = vmatprep.subr.bf16.mxu1 %v2299_v28 }
 0x483   :  { %1156 = vmatpush1.bf16.msra.mxu0 %v2303_v30  ;;  %1197 = vmatpush1.bf16.msra.mxu1 %v2305_v31 }
 0x484   :  { %1157 = vmatprep.subr.bf16.mxu0 %v2309_v32  ;;  %1198 = vmatprep.subr.bf16.mxu1 %v2313_v33 }
 0x487   :  { %1158 = vmatpush1.bf16.msra.mxu0 %v2317_v34  ;;  %1199 = vmatpush1.bf16.msra.mxu1 %v2319_v35 }
 0x488   :  { %1159 = vmatprep.subr.bf16.mxu0 %v2323_v36  ;;  %1200 = vmatprep.subr.bf16.mxu1 %v2327_v37 }
 0x48b   :  { %1160 = vmatpush1.bf16.msra.mxu0 %v2333_v39  ;;  %1201 = vmatpush1.bf16.msra.mxu1 %v2335_v40 }
 0x48c   :  { %1161 = vmatprep.subr.bf16.mxu0 %v2339_v41  ;;  %1202 = vmatprep.subr.bf16.mxu1 %v2341_v42 }
 0x48f   :  { %1162 = vmatpush1.bf16.msra.mxu0 %v2347_v43  ;;  %1203 = vmatpush1.bf16.msra.mxu1 %v2349_v44 }
 0x490   :  { %1265 = vmatprep.subr.bf16.mxu0 %v2686_v12  ;;  %1306 = vmatprep.subr.bf16.mxu1 %v2689_v13 }
 0x545   :  { %v1063_v14 = vpop.f32.mrb[32].mxu0  ;;  %v1104_v15 = vpop.f32.mrb[32].mxu1 }
 0x546   :  { %v1111_v17 = vadd.f32 %v1063_v14, %v2962_v16  ;;  %v1113_v20 = vadd.f32 %v1104_v15, %v2963_v18  ;;  %v1065_v21 = vpop.f32.mrb[33].mxu0  ;;  %v1106_v22 = vpop.f32.mrb[33].mxu1  ;;  %v2748_v14 = vld [vmem:[#allocation9 + $0x84] ss:$16 sps:$4 sm:$0xff]   ;;  %v2751_v15 = vld [vmem:[#allocation9 + $0x8c] ss:$16 sps:$4 sm:$0xff]  }
 0x547   :  { %v1112_v24 = vadd.f32 %v1065_v21, %v2964_v23  ;;  %v1114_v26 = vadd.f32 %v1106_v22, %v2965_v25  ;;  %v1067_v27 = vpop.f32.mrb[34].mxu0  ;;  %v1108_v28 = vpop.f32.mrb[34].mxu1  ;;  %v2754_v16 = vld [vmem:[#allocation9 + $0x80] ss:$16 sps:$4 sm:$0xff]   ;;  %v2760_v18 = vld [vmem:[#allocation9 + $0xa4] ss:$16 sps:$4 sm:$0xff]  }
 0x548   :  { %v1758_v30 = vmul.f32 -1.442695, %v1111_v17  ;;  %v1068_v31 = vpop.f32.mrb[35].mxu0  ;;  %v1109_v32 = vpop.f32.mrb[35].mxu1  ;;  %v2757_v17 = vld [vmem:[#allocation9 + $0x88] ss:$16 sps:$4 sm:$0xff]  }
 0x549   :  { %v1759_v33 = vmul.f32 -1.442695, %v1112_v24  ;;  %v1760_v34 = vmul.f32 -1.442695, %v1114_v26  ;;  %v2766_v21 = vld [vmem:[#allocation9 + $0xa0] ss:$16 sps:$4 sm:$0xff]  }
 0x54a   :  { %1914 = vpow2.f32 %v1758_v30  ;;  %v2769_v22 = vld [vmem:[#allocation9 + $0xa8] ss:$16 sps:$4 sm:$0xff]   ;;  %v2772_v23 = vld [vmem:[#allocation9 + $0xc4] ss:$16 sps:$4 sm:$0xff]   ;;  %v2775_v24 = vld [vmem:[#allocation9 + $0xcc] ss:$16 sps:$4 sm:$0xff]  }
 0x54b   :  { %1916 = vpow2.f32 %v1759_v33  ;;  %v2778_v25 = vld [vmem:[#allocation9 + $0xc0] ss:$16 sps:$4 sm:$0xff]   ;;  %v2781_v26 = vld [vmem:[#allocation9 + $0xc8] ss:$16 sps:$4 sm:$0xff]   ;;  %v2784_v27 = vld [vmem:[#allocation9 + $0xe4] ss:$16 sps:$4 sm:$0xff]  }
 0x54c   :  { %1918 = vpow2.f32 %v1760_v34  ;;  %v2787_v28 = vld [vmem:[#allocation9 + $0xec] ss:$16 sps:$4 sm:$0xff]   ;;  %v2966_v32 = vld [vmem:[#allocation28_spill] sm:$0xff] }
 0x54d   :  { %1920 = vtanh.f32 %v1113_v20  ;;  %v2763_v20 = vld [vmem:[#allocation9 + $0xac] ss:$16 sps:$4 sm:$0xff]  }
 0x54e   :  { %v2967_v34 = vld [vmem:[#allocation29_spill] sm:$0xff] }
 0x554   :  { %v1915_v35 = vpop.eup %1914 }
 0x555   :  { %v1917_v36 = vpop.eup %1916  ;;  %v1118_v37 = vadd.f32 1.0, %v1915_v35 }
 0x556   :  { %v1124_v39 = vadd.f32 1.0, %v1917_v36  ;;  %v1919_v40 = vpop.eup %1918 }
 0x557   :  { %1922 = vrcp.f32 %v1118_v37  ;;  %v1921_v41 = vpop.eup %1920  ;;  %v1131_v51 = vadd.f32 1.0, %v1919_v40 }
 0x558   :  { %1924 = vrcp.f32 %v1124_v39  ;;  %v2968_v39 = vld [vmem:[#allocation30_spill] sm:$0xff] }
 0x559   :  { %1926 = vrcp.f32 %v1131_v51 }
 0x561   :  { %v1923_v42 = vpop.eup %1922 }
 0x562   :  { %v1925_v38 = vpop.eup %1924  ;;  %v1135_v3 = vmul.f32 %v1923_v42, %v1921_v41  ;;  %v2969_v41 = vld [vmem:[#allocation31_spill] sm:$0xff] }
 0x563   :  { %v1134_v29 = vmul.f32 %v1925_v38, %v2622_v55  ;;  %v1927_v0 = vpop.eup %1926  ;;  %v2710_v55 = vld [vmem:[#allocation9 + $0x24] ss:$16 sps:$4 sm:$0xff]  }
 0x565   :  { %v2697_v62 = vadd.f32 %v1135_v3, %v1134_v29 }
 0x567   :  { %1928 = vtanh.f32 %v2697_v62 }
 0x571   :  { %v1929_v48 = vpop.eup %1928 }
 0x572   :  { %v2700_v46 = vmul.f32 %v1929_v48, %v1927_v0 }
 0x574   :  { %v1146_v9 = vpack.c.bf16 %v2700_v46, %v2700_v46 }
 0x576   :  { %1180 = vmatmul.mubr.bf16.vlgmr.msra.gmra.mrb[36].mxu0 %v1146_v9  ;;  %1221 = vmatmul.mubr.bf16.vlgmr.msra.gmra.mrb[36].mxu1 %v1146_v9 }
 0x577   :  { %1266 = vmatpush1.bf16.msra.mxu0 %v2704_v53  ;;  %1307 = vmatpush1.bf16.msra.mxu1 %v2707_v61 }
 0x578   :  { %1267 = vmatprep.subr.bf16.mxu0 %v2710_v55  ;;  %1308 = vmatprep.subr.bf16.mxu1 %v2713_v57 }
 0x579   :  { %1297 = vmatprep.mubr.bf16.mxu0 %v2955_v7  ;;  %1338 = vmatprep.mubr.bf16.mxu1 %v2955_v7 }
 0x57b   :  { %1268 = vmatpush1.bf16.msra.mxu0 %v2718_v56  ;;  %1309 = vmatpush1.bf16.msra.mxu1 %v2721_v58 }
 0x57c   :  { %1269 = vmatprep.subr.bf16.mxu0 %v2724_v47  ;;  %1310 = vmatprep.subr.bf16.mxu1 %v2727_v59 }
 0x57f   :  { %1270 = vmatpush1.bf16.msra.mxu0 %v2730_v60  ;;  %1311 = vmatpush1.bf16.msra.mxu1 %v2733_v63 }
 0x580   :  { %1271 = vmatprep.subr.bf16.mxu0 %v2736_v52  ;;  %1312 = vmatprep.subr.bf16.mxu1 %v2739_v2 }
 0x583   :  { %1272 = vmatpush1.bf16.msra.mxu0 %v2742_v4  ;;  %1313 = vmatpush1.bf16.msra.mxu1 %v2745_v45 }
 0x584   :  { %1273 = vmatprep.subr.bf16.mxu0 %v2748_v14  ;;  %1314 = vmatprep.subr.bf16.mxu1 %v2751_v15 }
 0x587   :  { %1274 = vmatpush1.bf16.msra.mxu0 %v2754_v16  ;;  %1315 = vmatpush1.bf16.msra.mxu1 %v2757_v17 }
 0x588   :  { %1275 = vmatprep.subr.bf16.mxu0 %v2760_v18  ;;  %1316 = vmatprep.subr.bf16.mxu1 %v2763_v20 }
 0x58b   :  { %1276 = vmatpush1.bf16.msra.mxu0 %v2766_v21  ;;  %1317 = vmatpush1.bf16.msra.mxu1 %v2769_v22 }
 0x58c   :  { %1277 = vmatprep.subr.bf16.mxu0 %v2772_v23  ;;  %1318 = vmatprep.subr.bf16.mxu1 %v2775_v24 }
 0x58f   :  { %1278 = vmatpush1.bf16.msra.mxu0 %v2778_v25  ;;  %1319 = vmatpush1.bf16.msra.mxu1 %v2781_v26 }
 0x590   :  { %1279 = vmatprep.subr.bf16.mxu0 %v2784_v27  ;;  %1320 = vmatprep.subr.bf16.mxu1 %v2787_v28 }
 0x593   :  { %1280 = vmatpush1.bf16.msra.mxu0 %v2347_v43  ;;  %1321 = vmatpush1.bf16.msra.mxu1 %v2349_v44 }
 0x594   :  { %1383 = vmatprep.subr.bf16.mxu0 %v2686_v12  ;;  %1424 = vmatprep.subr.bf16.mxu1 %v2689_v13 }
 0x649   :  { %v1181_v30 = vpop.f32.mrb[36].mxu0  ;;  %v1222_v31 = vpop.f32.mrb[36].mxu1 }
 0x64a   :  { %v1229_v33 = vadd.f32 %v1181_v30, %v2966_v32  ;;  %v1231_v35 = vadd.f32 %v1222_v31, %v2967_v34  ;;  %v1183_v36 = vpop.f32.mrb[37].mxu0  ;;  %v1224_v37 = vpop.f32.mrb[37].mxu1 }
 0x64b   :  { %v1230_v40 = vadd.f32 %v1183_v36, %v2968_v39  ;;  %v1232_v42 = vadd.f32 %v1224_v37, %v2969_v41  ;;  %v1185_v38 = vpop.f32.mrb[38].mxu0  ;;  %v1226_v43 = vpop.f32.mrb[38].mxu1 }
 0x64c   :  { %v1761_v3 = vmul.f32 -1.442695, %v1229_v33  ;;  %v1186_v44 = vpop.f32.mrb[39].mxu0  ;;  %v1227_v51 = vpop.f32.mrb[39].mxu1 }
 0x64d   :  { %v1762_v12 = vmul.f32 -1.442695, %v1230_v40  ;;  %v1763_v13 = vmul.f32 -1.442695, %v1232_v42 }
 0x64e   :  { %1930 = vpow2.f32 %v1761_v3 }
 0x64f   :  { %1932 = vpow2.f32 %v1762_v12 }
 0x650   :  { %1934 = vpow2.f32 %v1763_v13 }
 0x651   :  { %1936 = vtanh.f32 %v1231_v35 }
 0x658   :  { %v1931_v29 = vpop.eup %1930 }
 0x659   :  { %v1933_v0 = vpop.eup %1932  ;;  %v1236_v48 = vadd.f32 1.0, %v1931_v29 }
 0x65a   :  { %v1242_v9 = vadd.f32 1.0, %v1933_v0  ;;  %v1935_v30 = vpop.eup %1934 }
 0x65b   :  { %1938 = vrcp.f32 %v1236_v48  ;;  %v1937_v31 = vpop.eup %1936  ;;  %v1249_v33 = vadd.f32 1.0, %v1935_v30  ;;  %v2974_v48 = vld [vmem:[#allocation36_spill] sm:$0xff]  ;;  %v2975_v30 = vld [vmem:[#allocation37_spill] sm:$0xff] }
 0x65c   :  { %1940 = vrcp.f32 %v1242_v9 }
 0x65d   :  { %1942 = vrcp.f32 %v1249_v33 }
 0x665   :  { %v1939_v32 = vpop.eup %1938 }
 0x666   :  { %v1941_v34 = vpop.eup %1940  ;;  %v1253_v36 = vmul.f32 %v1939_v32, %v1937_v31 }
 0x667   :  { %v1252_v37 = vmul.f32 %v1941_v34, %v2697_v62  ;;  %v1943_v40 = vpop.eup %1942  ;;  %v2009_v62 = vld [vmem:[#allocation9 + $0xe8] ss:$16 sps:$4 sm:$0xff]  }
 0x669   :  { %v2799_v39 = vadd.f32 %v1253_v36, %v1252_v37  ;;  %v2976_v36 = vld [vmem:[#allocation38_spill] sm:$0xff]  ;;  %v2977_v37 = vld [vmem:[#allocation39_spill] sm:$0xff] }
 0x66b   :  { %1944 = vtanh.f32 %v2799_v39 }
 0x675   :  { %v1945_v41 = vpop.eup %1944 }
 0x676   :  { %v2802_v42 = vmul.f32 %v1945_v41, %v1943_v40 }
 0x678   :  { %v1264_v35 = vpack.c.bf16 %v2802_v42, %v2802_v42 }
 0x67a   :  { %1298 = vmatmul.mubr.bf16.vlgmr.msra.gmra.mrb[40].mxu0 %v1264_v35  ;;  %1339 = vmatmul.mubr.bf16.vlgmr.msra.gmra.mrb[40].mxu1 %v1264_v35 }
 0x67b   :  { %1384 = vmatpush1.bf16.msra.mxu0 %v2704_v53  ;;  %1425 = vmatpush1.bf16.msra.mxu1 %v2707_v61 }
 0x67c   :  { %1385 = vmatprep.subr.bf16.mxu0 %v2710_v55  ;;  %1426 = vmatprep.subr.bf16.mxu1 %v2713_v57  ;;  %v2970_v55 = vld [vmem:[#allocation32_spill] sm:$0xff] }
 0x67d   :  { %1415 = vmatprep.mubr.bf16.mxu0 %v2955_v7  ;;  %1456 = vmatprep.mubr.bf16.mxu1 %v2955_v7  ;;  %v2008_v7 = vld [vmem:[#allocation9 + $0xe0] ss:$16 sps:$4 sm:$0xff]  }
 0x67f   :  { %1386 = vmatpush1.bf16.msra.mxu0 %v2718_v56  ;;  %1427 = vmatpush1.bf16.msra.mxu1 %v2721_v58  ;;  %v2971_v56 = vld [vmem:[#allocation33_spill] sm:$0xff] }
 0x680   :  { %1387 = vmatprep.subr.bf16.mxu0 %v2724_v47  ;;  %1428 = vmatprep.subr.bf16.mxu1 %v2727_v59 }
 0x683   :  { %1388 = vmatpush1.bf16.msra.mxu0 %v2730_v60  ;;  %1429 = vmatpush1.bf16.msra.mxu1 %v2733_v63  ;;  %v2972_v60 = vld [vmem:[#allocation34_spill] sm:$0xff] }
 0x684   :  { %1389 = vmatprep.subr.bf16.mxu0 %v2736_v52  ;;  %1430 = vmatprep.subr.bf16.mxu1 %v2739_v2  ;;  %v2973_v52 = vld [vmem:[#allocation35_spill] sm:$0xff] }
 0x687   :  { %1390 = vmatpush1.bf16.msra.mxu0 %v2742_v4  ;;  %1431 = vmatpush1.bf16.msra.mxu1 %v2745_v45 }
 0x688   :  { %1391 = vmatprep.subr.bf16.mxu0 %v2748_v14  ;;  %1432 = vmatprep.subr.bf16.mxu1 %v2751_v15 }
 0x68b   :  { %1392 = vmatpush1.bf16.msra.mxu0 %v2754_v16  ;;  %1433 = vmatpush1.bf16.msra.mxu1 %v2757_v17 }
 0x68c   :  { %1393 = vmatprep.subr.bf16.mxu0 %v2760_v18  ;;  %1434 = vmatprep.subr.bf16.mxu1 %v2763_v20 }
 0x68f   :  { %1394 = vmatpush1.bf16.msra.mxu0 %v2766_v21  ;;  %1435 = vmatpush1.bf16.msra.mxu1 %v2769_v22 }
 0x690   :  { %1395 = vmatprep.subr.bf16.mxu0 %v2772_v23  ;;  %1436 = vmatprep.subr.bf16.mxu1 %v2775_v24 }
 0x693   :  { %1396 = vmatpush1.bf16.msra.mxu0 %v2778_v25  ;;  %1437 = vmatpush1.bf16.msra.mxu1 %v2781_v26 }
 0x694   :  { %1397 = vmatprep.subr.bf16.mxu0 %v2784_v27  ;;  %1438 = vmatprep.subr.bf16.mxu1 %v2787_v28 }
 0x697   :  { %1398 = vmatpush1.bf16.msra.mxu0 %v2008_v7  ;;  %1439 = vmatpush1.bf16.msra.mxu1 %v2009_v62 }
 0x74d   :  { %v1299_v53 = vpop.f32.mrb[40].mxu0  ;;  %v1340_v61 = vpop.f32.mrb[40].mxu1 }
 0x74e   :  { %v1347_v57 = vadd.f32 %v1299_v53, %v2970_v55  ;;  %v1349_v58 = vadd.f32 %v1340_v61, %v2971_v56  ;;  %v1301_v47 = vpop.f32.mrb[41].mxu0  ;;  %v1342_v59 = vpop.f32.mrb[41].mxu1 }
 0x74f   :  { %v1348_v63 = vadd.f32 %v1301_v47, %v2972_v60  ;;  %v1350_v2 = vadd.f32 %v1342_v59, %v2973_v52  ;;  %v1303_v4 = vpop.f32.mrb[42].mxu0  ;;  %v1344_v45 = vpop.f32.mrb[42].mxu1 }
 0x750   :  { %v1764_v14 = vmul.f32 -1.442695, %v1347_v57  ;;  %v1304_v15 = vpop.f32.mrb[43].mxu0  ;;  %v1345_v16 = vpop.f32.mrb[43].mxu1 }
 0x751   :  { %v1765_v17 = vmul.f32 -1.442695, %v1348_v63  ;;  %v1766_v18 = vmul.f32 -1.442695, %v1350_v2 }
 0x752   :  { %1946 = vpow2.f32 %v1764_v14  ;;  %v2160_v14 = vmov 1934713408  }
 0x753   :  { %1948 = vpow2.f32 %v1765_v17  ;;  %v1572_v15 = vunpack.c.l.s4 %v2160_v14 }
 0x754   :  { %1950 = vpow2.f32 %v1766_v18 }
 0x755   :  { %1952 = vtanh.f32 %v1349_v58  ;;  %v1573_v18 = vunpack.c.0.s8 %v1572_v15 }
 0x75c   :  { %v1947_v20 = vpop.eup %1946 }
 0x75d   :  { %v1949_v21 = vpop.eup %1948  ;;  %v1354_v22 = vadd.f32 1.0, %v1947_v20 }
 0x75e   :  { %v1360_v23 = vadd.f32 1.0, %v1949_v21  ;;  %v1951_v24 = vpop.eup %1950 }
 0x75f   :  { %1954 = vrcp.f32 %v1354_v22  ;;  %v1953_v25 = vpop.eup %1952  ;;  %v1367_v38 = vadd.f32 1.0, %v1951_v24 }
 0x760   :  { %1956 = vrcp.f32 %v1360_v23 }
 0x761   :  { %1958 = vrcp.f32 %v1367_v38 }
 0x769   :  { %v1955_v26 = vpop.eup %1954 }
 0x76a   :  { %v1957_v27 = vpop.eup %1956  ;;  %v1371_v28 = vmul.f32 %v1955_v26, %v1953_v25  ;;  %v1576_v25 = vsub.s32 %v1573_v18, %v2961_v6 }
 0x76b   :  { %v1370_v43 = vmul.f32 %v1957_v27, %v2799_v39  ;;  %v1959_v44 = vpop.eup %1958 }
 0x76d   :  { %v1372_v3 = vadd.f32 %v1371_v28, %v1370_v43 }
 0x76f   :  { %1960 = vtanh.f32 %v1372_v3 }
 0x779   :  { %v1961_v51 = vpop.eup %1960 }
 0x77a   :  { %v2841_v12 = vmul.f32 %v1961_v51, %v1959_v44 }
 0x77c   :  { %v1382_v13 = vpack.c.bf16 %v2841_v12, %v2841_v12  ;;  %v1537_v20 = vcombine.low %v2700_v46, %v2841_v12  ;;  %v1538_v21 = vcombine.high %v2700_v46, %v2841_v12 }
 0x77e   :  { %1416 = vmatmul.mubr.bf16.vlgmr.msra.gmra.mrb[44].mxu0 %v1382_v13  ;;  %1457 = vmatmul.mubr.bf16.vlgmr.msra.gmra.mrb[44].mxu1 %v1382_v13 }
 0x851   :  { %v1417_v29 = vpop.f32.mrb[44].mxu0  ;;  %v1458_v0 = vpop.f32.mrb[44].mxu1 }
 0x852   :  { %v1465_v9 = vadd.f32 %v1417_v29, %v2974_v48  ;;  %v1467_v31 = vadd.f32 %v1458_v0, %v2975_v30  ;;  %v1419_v32 = vpop.f32.mrb[45].mxu0  ;;  %v1460_v34 = vpop.f32.mrb[45].mxu1 }
 0x853   :  { %v1466_v33 = vadd.f32 %v1419_v32, %v2976_v36  ;;  %v1468_v39 = vadd.f32 %v1460_v34, %v2977_v37  ;;  %v1421_v40 = vpop.f32.mrb[46].mxu0  ;;  %v1462_v41 = vpop.f32.mrb[46].mxu1 }
 0x854   :  { %v1767_v35 = vmul.f32 -1.442695, %v1465_v9  ;;  %v1422_v7 = vpop.f32.mrb[47].mxu0  ;;  %v1463_v62 = vpop.f32.mrb[47].mxu1 }
 0x855   :  { %v1768_v53 = vmul.f32 -1.442695, %v1466_v33  ;;  %v1769_v61 = vmul.f32 -1.442695, %v1468_v39 }
 0x856   :  { %1962 = vpow2.f32 %v1767_v35 }
 0x857   :  { %1964 = vpow2.f32 %v1768_v53 }
 0x858   :  { %1966 = vpow2.f32 %v1769_v61 }
 0x859   :  { %1968 = vtanh.f32 %v1467_v31 }
 0x860   :  { %v1963_v55 = vpop.eup %1962 }
 0x861   :  { %v1965_v57 = vpop.eup %1964  ;;  %v1472_v56 = vadd.f32 1.0, %v1963_v55 }
 0x862   :  { %v1478_v58 = vadd.f32 1.0, %v1965_v57  ;;  %v1967_v47 = vpop.eup %1966 }
 0x863   :  { %1970 = vrcp.f32 %v1472_v56  ;;  %v1969_v59 = vpop.eup %1968  ;;  %v1485_v2 = vadd.f32 1.0, %v1967_v47 }
 0x864   :  { %1972 = vrcp.f32 %v1478_v58 }
 0x865   :  { %1974 = vrcp.f32 %v1485_v2 }
 0x86d   :  { %v1971_v60 = vpop.eup %1970 }
 0x86e   :  { %v1973_v63 = vpop.eup %1972  ;;  %v1489_v52 = vmul.f32 %v1971_v60, %v1969_v59 }
 0x86f   :  { %v1488_v4 = vmul.f32 %v1973_v63, %v1372_v3  ;;  %v1975_v16 = vpop.eup %1974 }
 0x871   :  { %v1490_v45 = vadd.f32 %v1489_v52, %v1488_v4 }
 0x873   :  { %1976 = vtanh.f32 %v1490_v45  ;;  %1496 = vst [vmem:[#allocation13] sm:$0xff] %v1490_v45 }
 0x87d   :  { %v1977_v17 = vpop.eup %1976 }
 0x87e   :  { %v1492_v22 = vmul.f32 %v1977_v17, %v1975_v16 }
 0x880   :  { %1495 = vst [vmem:[#allocation11] sm:$0xff] %v1492_v22  ;;  %v1553_v23 = vcombine.low %v2802_v42, %v1492_v22  ;;  %v1554_v24 = vcombine.high %v2802_v42, %v1492_v22 }
 0x881   :  { %2087 = shalt.err (!%p2084_p0)
}
 0x882   :  { %s2088_s18 = scalar_lea.hbm %s2927_s5, 128 }
 0x883   :  { %p2089_p1 = scmp.ne.s32.totalorder %s2927_s5, %s2088_s18  ;;  %p2092_p2 = scmp.lt.u32.totalorder %s2088_s18, %s2927_s5 }
 0x885   :  { %p2094_p3 = pnand %p2092_p2, %p2089_p1 }
 0x887   :  { %2097 = shalt.err (!%p2094_p3)
}
 0x888   :  { %1670 = dma.vmem_to_hbm [thread:$0]  %s1668_s8, 128, %s2927_s5, [#allocation12]   ;;  %v1545_v6 = vrot.slane %v1537_v20, %v2628_v49  ;;  %v1552_v46 = vrot.slane %v1538_v21, %v2628_v49  ;;  %v1561_v42 = vrot.slane %v1553_v23, %v2628_v49  ;;  %v1568_v26 = vrot.slane %v1554_v24, %v2628_v49 }
 0x889   :  { %s2098_s24 = scalar_lea.vmem %s2853_s14, 128  ;;  %p2103_p5 = scmp.lt.s32.totalorder %s2853_s14, %s2853_s14 }
 0x88a   :  { %p2099_p4 = scmp.ne.s32.totalorder %s2853_s14, %s2098_s24  ;;  %p2104_p6 = scmp.lt.s32.totalorder %s2098_s24, %s2098_s24 }
 0x88c   :  { %p2105_p7 = por %p2104_p6, %p2103_p5 }
 0x88e   :  { %p2106_p8 = pnand %p2105_p7, %p2099_p4 }
 0x890   :  { %2109 = shalt.err (!%p2106_p8)
}
 0x891   :  { %s2110_s5 = scalar_lea.hbm %s2928_s6, 128 }
 0x892   :  { %p2111_p9 = scmp.ne.s32.totalorder %s2928_s6, %s2110_s5  ;;  %p2114_p10 = scmp.lt.u32.totalorder %s2110_s5, %s2928_s6 }
 0x894   :  { %p2116_p11 = pnand %p2114_p10, %p2111_p9 }
 0x896   :  { %2119 = shalt.err (!%p2116_p11)
}
 0x897   :  { %1680 = dma.vmem_to_hbm [thread:$0]  %s2853_s14, 128, %s2928_s6, [#allocation12]   ;;  %v1601_v49 = vcombine.low %v1545_v6, %v1561_v42  ;;  %v1602_v27 = vcombine.high %v1545_v6, %v1561_v42  ;;  %v1617_v28 = vcombine.low %v1552_v46, %v1568_v26  ;;  %v1618_v38 = vcombine.high %v1552_v46, %v1568_v26 }
 0x898   :  { %v1577_v43 = vrot.slane %v1569_v50, %v1576_v25  ;;  %v1584_v3 = vrot.slane %v1570_v1, %v1576_v25  ;;  %s2163_s11 = smov [#allocation10]   ;;  %v1593_v29 = vrot.slane %v1585_v54, %v1576_v25  ;;  %v1600_v0 = vrot.slane %v1586_v11, %v1576_v25 }
 0x899   :  { %s1654_s0 = sshll.u32 %s2163_s11, 4  ;;  %v1609_v44 = vrot.slane %v1601_v49, %v1576_v25  ;;  %v1616_v51 = vrot.slane %v1602_v27, %v1576_v25  ;;  %v1625_v12 = vrot.slane %v1617_v28, %v1576_v25  ;;  %v1632_v13 = vrot.slane %v1618_v38, %v1576_v25  ;;  %s2903_s0 = int_to_ptr.vmem [resolvable:$true] %s1654_s0 }
 0x89a   :  { %s2120_s6 = scalar_lea.vmem %s2903_s0, 1024  ;;  %p2125_p13 = scmp.lt.s32.totalorder %s2903_s0, %s2903_s0 }
 0x89b   :  { %v1633_v48 = vcombine.low %v1577_v43, %v1609_v44  ;;  %v1634_v50 = vcombine.high %v1577_v43, %v1609_v44  ;;  %v1635_v9 = vcombine.low %v1584_v3, %v1616_v51  ;;  %v1636_v30 = vcombine.high %v1584_v3, %v1616_v51  ;;  %p2121_p12 = scmp.ne.s32.totalorder %s2903_s0, %s2120_s6  ;;  %p2126_p0 = scmp.lt.s32.totalorder %s2120_s6, %s2120_s6 }
 0x89c   :  { %v1637_v5 = vcombine.low %v1593_v29, %v1625_v12  ;;  %v1638_v19 = vcombine.high %v1593_v29, %v1625_v12  ;;  %v1639_v1 = vcombine.low %v1600_v0, %v1632_v13  ;;  %v1640_v31 = vcombine.high %v1600_v0, %v1632_v13 }
 0x89d   :  { %1641 = vst [vmem:[#allocation10] sm:$0xff] %v1633_v48  ;;  %1642 = vst [vmem:[#allocation10 + $0x8] sm:$0xff] %v1634_v50  ;;  %p2127_p1 = por %p2126_p0, %p2125_p13 }
 0x89e   :  { %1643 = vst [vmem:[#allocation10 + $0x10] sm:$0xff] %v1635_v9  ;;  %1644 = vst [vmem:[#allocation10 + $0x18] sm:$0xff] %v1636_v30 }
 0x89f   :  { %1645 = vst [vmem:[#allocation10 + $0x20] sm:$0xff] %v1637_v5  ;;  %1646 = vst [vmem:[#allocation10 + $0x28] sm:$0xff] %v1638_v19  ;;  %p2128_p2 = pnand %p2127_p1, %p2121_p12 }
 0x8a0   :  { %1647 = vst [vmem:[#allocation10 + $0x30] sm:$0xff] %v1639_v1  ;;  %1648 = vst [vmem:[#allocation10 + $0x38] sm:$0xff] %v1640_v31 }
 0x8a1   :  { %2131 = shalt.err (!%p2128_p2)
}
 0x8a2   :  { %s2132_s7 = scalar_lea.hbm %s2926_s4, 1024 }
 0x8a3   :  { %p2133_p3 = scmp.ne.s32.totalorder %s2926_s4, %s2132_s7  ;;  %p2136_p4 = scmp.lt.u32.totalorder %s2132_s7, %s2926_s4 }
 0x8a5   :  { %p2138_p5 = pnand %p2136_p4, %p2133_p3 }
 0x8a7   :  { %2141 = shalt.err (!%p2138_p5)
}
 0x8a8   :  { %s2164_s15 = smov 128   ;;  %s2165_s16 = smov 8  }
 0x8a9   :  { %1660 = dma.vmem_to_hbm [thread:$0]  %s2903_s0, 1024, %s2926_s4, [#allocation6], %s2164_s15, %s2164_s15, %s2165_s16  }
 0x8aa   :  { %2146 = dma.done.wait [#allocation6], 1024  }
 0x8ab   :  { %2147 = vsyncadd [#allocation6], 4294966272 }
 0x8ac   :  { %2148 = dma.done.wait [#allocation12], 256  }
 0x8ad   :  { %2149 = vsyncadd [#allocation12], 4294967040 }
 0x8ae   :  { %1690 = vsyncpa [#allocation5], 1 }
 0x8af   :  { %1691 = vsyncpa [#allocation8], 1 }
 0x8b0   :  { %1692 = vsyncpa [#allocation6], 1 }
 0x8b1   :  { %1693 = vsyncpa [#allocation12], 1 }

</bundles_post_ra>
